<compile_context>
chip_gen: v6e
topology: v6e:2x2x1
jax: 0.10.0
libtpu: 0.0.40
codegen_flags: <defaults>
</compile_context>

<pallas_src>
import jax
import jax.numpy as jnp
import numpy as np
from jax.experimental import pallas as pl
from jax.experimental.pallas import tpu as pltpu

EMBEDDING_SIZE = 50          # matches the module-level constant in test2.py
HIDDEN_SIZE = 32
INPUT_SIZE = 64              # vocabulary size
OUTPUT_SIZE = 64
SEQ_LEN = 8                  # number of GRU steps run inside one kernel call

LANE = 128                   # vreg lane width; every gate / state chunk is padded to it


def _rnn_seq_kernel(tokens_ref,      # SMEM (T,) int32  (scalar prefetch)
                    emb_ref,         # VMEM (V, 128)    embedding table, lane-padded
                    h0_ref,          # VMEM (1, 128)    initial hidden, lane-padded
                    w_ih_ref,        # VMEM (128, 384)  input->gates weight (gate-per-128-lane block)
                    b_ih_ref,        # VMEM (1, 384)    input gate biases
                    w_hh_ref,        # VMEM (128, 384)  hidden->gates weight (gate-per-128-lane block)
                    b_hh_ref,        # VMEM (1, 384)    hidden gate biases
                    w_out_ref,       # VMEM (128, 128)  output linear weight, padded
                    b_out_ref,       # VMEM (1, 128)    output linear bias, padded
                    logp_ref,        # out  (T, 128)    per-step log-probs (lane+sublane dense)
                    h_out_ref):      # out  (1, 128)    final hidden
    V = emb_ref.shape[0]
    T = logp_ref.shape[0]

    # ---- hoisted: gather all T embedding rows, relu, ONE input-projection matmul ----
    rows = []
    for t in range(T):
        tok = tokens_ref[t]
        tok = jnp.maximum(jnp.minimum(tok, V - 1), 0)   # clamp: VMEM loads have no bounds check
        rows.append(emb_ref[pl.ds(tok, 1), :])          # (1, 128) dynamic-sublane gather
    x_all = jnp.maximum(jnp.concatenate(rows, axis=0), 0.0)          # (T, 128)  F.relu(embedding)
    gx = jnp.dot(x_all, w_ih_ref[...], preferred_element_type=jnp.float32) + b_ih_ref[...]
    gx_r = gx[:, 0 * LANE:1 * LANE]                                   # (T, 128) each: full-vreg gate blocks
    gx_z = gx[:, 1 * LANE:2 * LANE]
    gx_n = gx[:, 2 * LANE:3 * LANE]

    # ---- serial recurrence: h carried as a register value, fully unrolled ----
    h = h0_ref[...]                                                   # (1, 128); padded lanes are 0
    hs = []
    for t in range(T):
        gh = jnp.dot(h, w_hh_ref[...], preferred_element_type=jnp.float32) + b_hh_ref[...]
        r = jax.nn.sigmoid(gx_r[t:t + 1, :] + gh[:, 0 * LANE:1 * LANE])
        z = jax.nn.sigmoid(gx_z[t:t + 1, :] + gh[:, 1 * LANE:2 * LANE])
        n = jnp.tanh(gx_n[t:t + 1, :] + r * gh[:, 2 * LANE:3 * LANE])
        h = (1.0 - z) * n + z * h                                     # padded lanes provably stay 0
        hs.append(h)
    h_out_ref[...] = h                                                # written exactly once

    # ---- hoisted: ONE output matmul + masked log_softmax + ONE dense store ----
    h_all = jnp.concatenate(hs, axis=0)                               # (T, 128)
    logits = jnp.dot(h_all, w_out_ref[...], preferred_element_type=jnp.float32) + b_out_ref[...]
    lane_idx = jax.lax.broadcasted_iota(jnp.int32, logits.shape, 1)
    logits = jnp.where(lane_idx < OUTPUT_SIZE, logits, -1e30)         # mask padded output lanes
    m = jnp.max(logits, axis=-1, keepdims=True)
    shifted = logits - m
    lse = jnp.log(jnp.sum(jnp.exp(shifted), axis=-1, keepdims=True))
    logp_ref[...] = shifted - lse


def prepare_params(params):
    """Pad / lay out the natural (PyTorch-shaped) parameters into the kernel layout."""
    emb, w_ih_t, w_hh_t, b_ih, b_hh, w_out_t, b_out = params
    V, E = emb.shape
    H = w_hh_t.shape[0]
    O = w_out_t.shape[1]

    emb_pad = jnp.zeros((V, LANE), jnp.float32).at[:, :E].set(emb)

    # Each of the 3 gate outputs [r, z, n] (PyTorch GRU order) occupies its own
    # 128-lane block so every gate slice in the kernel is a whole vreg.
    w_ih_blk = jnp.zeros((LANE, 3 * LANE), jnp.float32)
    b_ih_blk = jnp.zeros((1, 3 * LANE), jnp.float32)
    w_hh_blk = jnp.zeros((LANE, 3 * LANE), jnp.float32)
    b_hh_blk = jnp.zeros((1, 3 * LANE), jnp.float32)
    for g in range(3):
        w_ih_blk = w_ih_blk.at[:E, g * LANE:g * LANE + H].set(w_ih_t[:, g * H:(g + 1) * H])
        b_ih_blk = b_ih_blk.at[:, g * LANE:g * LANE + H].set(b_ih[:, g * H:(g + 1) * H])
        w_hh_blk = w_hh_blk.at[:H, g * LANE:g * LANE + H].set(w_hh_t[:, g * H:(g + 1) * H])
        b_hh_blk = b_hh_blk.at[:, g * LANE:g * LANE + H].set(b_hh[:, g * H:(g + 1) * H])

    w_out_pad = jnp.zeros((LANE, LANE), jnp.float32).at[:H, :O].set(w_out_t)
    b_out_pad = jnp.zeros((1, LANE), jnp.float32).at[:, :O].set(b_out)
    return emb_pad, w_ih_blk, b_ih_blk, w_hh_blk, b_hh_blk, w_out_pad, b_out_pad


def rnn_forward(tokens, hidden, prepped, *, hidden_size=HIDDEN_SIZE, output_size=OUTPUT_SIZE):
    """tokens: int32 (T,); hidden: float32 (1, 1, H).
    Runs T sequential GRU steps (the PyTorch module's forward applied T times,
    threading the hidden state) inside ONE single-grid-step pallas_call.
    Returns (log_probs (T, O), final hidden (1, 1, H))."""
    emb_pad, w_ih_blk, b_ih_blk, w_hh_blk, b_hh_blk, w_out_pad, b_out_pad = prepped
    V = emb_pad.shape[0]
    T = tokens.shape[0]
    H = hidden_size
    O = output_size

    h0 = jnp.zeros((1, LANE), jnp.float32).at[:, :H].set(hidden.reshape(1, H))

    grid_spec = pltpu.PrefetchScalarGridSpec(
        num_scalar_prefetch=1,
        grid=(1,),
        in_specs=[
            pl.BlockSpec((V, LANE), lambda i, tok: (0, 0)),            # emb table (resident)
            pl.BlockSpec((1, LANE), lambda i, tok: (0, 0)),            # h0
            pl.BlockSpec((LANE, 3 * LANE), lambda i, tok: (0, 0)),     # W_ih (gate blocks)
            pl.BlockSpec((1, 3 * LANE), lambda i, tok: (0, 0)),        # b_ih
            pl.BlockSpec((LANE, 3 * LANE), lambda i, tok: (0, 0)),     # W_hh (gate blocks)
            pl.BlockSpec((1, 3 * LANE), lambda i, tok: (0, 0)),        # b_hh
            pl.BlockSpec((LANE, LANE), lambda i, tok: (0, 0)),         # output weight
            pl.BlockSpec((1, LANE), lambda i, tok: (0, 0)),            # output bias
        ],
        out_specs=[
            pl.BlockSpec((T, LANE), lambda i, tok: (0, 0)),            # all log-probs, one dense store
            pl.BlockSpec((1, LANE), lambda i, tok: (0, 0)),            # final hidden
        ],
    )

    logp_pad, h_pad = pl.pallas_call(
        _rnn_seq_kernel,
        out_shape=(jax.ShapeDtypeStruct((T, LANE), jnp.float32),
                   jax.ShapeDtypeStruct((1, LANE), jnp.float32)),
        grid_spec=grid_spec,
        compiler_params=pltpu.CompilerParams(dimension_semantics=("arbitrary",)),
    )(tokens, emb_pad, h0, w_ih_blk, b_ih_blk, w_hh_blk, b_hh_blk, w_out_pad, b_out_pad)

    logp = logp_pad[:, :O]
    h_new = h_pad[:, :H].reshape(1, 1, H)
    return logp, h_new


def init_params(key, vocab, emb_dim, hidden, out_dim):
    """Deterministic parameters matching the PyTorch module's shapes
    (GRU weights pre-transposed, gate order [r, z, n])."""
    ks = jax.random.split(key, 7)
    k = 1.0 / np.sqrt(hidden)
    emb = jax.random.normal(ks[0], (vocab, emb_dim), jnp.float32)
    w_ih_t = jax.random.uniform(ks[1], (emb_dim, 3 * hidden), jnp.float32, -k, k)
    w_hh_t = jax.random.uniform(ks[2], (hidden, 3 * hidden), jnp.float32, -k, k)
    b_ih = jax.random.uniform(ks[3], (1, 3 * hidden), jnp.float32, -k, k)
    b_hh = jax.random.uniform(ks[4], (1, 3 * hidden), jnp.float32, -k, k)
    w_out_t = jax.random.uniform(ks[5], (hidden, out_dim), jnp.float32, -k, k)
    b_out = jax.random.uniform(ks[6], (1, out_dim), jnp.float32, -k, k)
    return (emb, w_ih_t, w_hh_t, b_ih, b_hh, w_out_t, b_out)


def rnn_forward_ref(tokens, hidden, params):
    """Pure-JAX reference: the PyTorch forward applied token-by-token (f32)."""
    emb, w_ih_t, w_hh_t, b_ih, b_hh, w_out_t, b_out = params
    H = w_hh_t.shape[0]
    h = hidden.reshape(1, H)
    logps = []
    for t in range(tokens.shape[0]):
        x = jnp.maximum(emb[tokens[t]][None, :], 0.0)
        gx = x @ w_ih_t + b_ih
        gh = h @ w_hh_t + b_hh
        r = jax.nn.sigmoid(gx[:, 0:H] + gh[:, 0:H])
        z = jax.nn.sigmoid(gx[:, H:2 * H] + gh[:, H:2 * H])
        n = jnp.tanh(gx[:, 2 * H:3 * H] + r * gh[:, 2 * H:3 * H])
        h = (1.0 - z) * n + z * h
        logits = h @ w_out_t + b_out
        logps.append(jax.nn.log_softmax(logits, axis=1))
    return jnp.concatenate(logps, axis=0), h.reshape(1, 1, H)


if __name__ == "__main__":
    key = jax.random.PRNGKey(0)
    pkey, tkey = jax.random.split(key)

    params = init_params(pkey, INPUT_SIZE, EMBEDDING_SIZE, HIDDEN_SIZE, OUTPUT_SIZE)
    prepped = prepare_params(params)

    tokens = jax.random.randint(tkey, (SEQ_LEN,), 0, INPUT_SIZE, dtype=jnp.int32)
    hidden = jnp.zeros((1, 1, HIDDEN_SIZE), jnp.float32)   # RNN.initHidden()

    logp, h_new = rnn_forward(tokens, hidden, prepped)
    jax.block_until_ready((logp, h_new))

    logp_ref, h_ref = rnn_forward_ref(tokens, hidden, params)
    np.testing.assert_allclose(np.asarray(logp), np.asarray(logp_ref), rtol=1e-3, atol=1e-3)
    np.testing.assert_allclose(np.asarray(h_new), np.asarray(h_ref), rtol=1e-3, atol=1e-3)

    assert logp.shape == (SEQ_LEN, OUTPUT_SIZE) and h_new.shape == (1, 1, HIDDEN_SIZE)
    # TODO(synk): with >1 independent sequences, add a leading "parallel" batch grid
    # axis so both v7x TensorCores are used and the recurrent matmul gets >1 LHS row.
    print("KERNEL_OK")
</pallas_src>

<mosaic_0001>
module attributes {stable_mosaic.version = 11 : i64} {
  func.func @_rnn_seq_kernel(%arg0: i32, %arg1: memref<8xi32, #tpu.memory_space<smem>>, %arg2: memref<64x128xf32, #tpu.memory_space<vmem>>, %arg3: memref<1x128xf32, #tpu.memory_space<vmem>>, %arg4: memref<128x384xf32, #tpu.memory_space<vmem>>, %arg5: memref<1x384xf32, #tpu.memory_space<vmem>>, %arg6: memref<128x384xf32, #tpu.memory_space<vmem>>, %arg7: memref<1x384xf32, #tpu.memory_space<vmem>>, %arg8: memref<128x128xf32, #tpu.memory_space<vmem>>, %arg9: memref<1x128xf32, #tpu.memory_space<vmem>>, %arg10: memref<8x128xf32, #tpu.memory_space<vmem>>, %arg11: memref<1x128xf32, #tpu.memory_space<vmem>>) attributes {dimension_semantics = [#tpu.dimension_semantics<arbitrary>], iteration_bounds = array<i64: 1>, scalar_prefetch = 1 : i64, scratch_operands = 0 : i64, tpu.core_type = #tpu.core_type<tc>, window_params = [{pipeline_mode = #tpu.pipeline_mode<synchronous>, transform_indices = @transform_0, window_bounds = array<i64: 64, 128>}, {pipeline_mode = #tpu.pipeline_mode<synchronous>, transform_indices = @transform_1, window_bounds = array<i64: 1, 128>}, {pipeline_mode = #tpu.pipeline_mode<synchronous>, transform_indices = @transform_2, window_bounds = array<i64: 128, 384>}, {pipeline_mode = #tpu.pipeline_mode<synchronous>, transform_indices = @transform_3, window_bounds = array<i64: 1, 384>}, {pipeline_mode = #tpu.pipeline_mode<synchronous>, transform_indices = @transform_4, window_bounds = array<i64: 128, 384>}, {pipeline_mode = #tpu.pipeline_mode<synchronous>, transform_indices = @transform_5, window_bounds = array<i64: 1, 384>}, {pipeline_mode = #tpu.pipeline_mode<synchronous>, transform_indices = @transform_6, window_bounds = array<i64: 128, 128>}, {pipeline_mode = #tpu.pipeline_mode<synchronous>, transform_indices = @transform_7, window_bounds = array<i64: 1, 128>}, {pipeline_mode = #tpu.pipeline_mode<synchronous>, transform_indices = @transform_8, window_bounds = array<i64: 8, 128>}, {pipeline_mode = #tpu.pipeline_mode<synchronous>, transform_indices = @transform_9, window_bounds = array<i64: 1, 128>}]} {
    %c0 = arith.constant 0 : index
    %0 = memref.load %arg1[%c0] : memref<8xi32, #tpu.memory_space<smem>>
    %c63_i32 = arith.constant 63 : i32
    %1 = arith.minsi %0, %c63_i32 : i32
    %c0_i32 = arith.constant 0 : i32
    %2 = arith.maxsi %1, %c0_i32 : i32
    %3 = arith.index_cast %2 : i32 to index
    %c0_0 = arith.constant 0 : index
    %4 = vector.load %arg2[%3, %c0_0] : memref<64x128xf32, #tpu.memory_space<vmem>>, vector<1x128xf32>
    %c1 = arith.constant 1 : index
    %5 = memref.load %arg1[%c1] : memref<8xi32, #tpu.memory_space<smem>>
    %c63_i32_1 = arith.constant 63 : i32
    %6 = arith.minsi %5, %c63_i32_1 : i32
    %c0_i32_2 = arith.constant 0 : i32
    %7 = arith.maxsi %6, %c0_i32_2 : i32
    %8 = arith.index_cast %7 : i32 to index
    %c0_3 = arith.constant 0 : index
    %9 = vector.load %arg2[%8, %c0_3] : memref<64x128xf32, #tpu.memory_space<vmem>>, vector<1x128xf32>
    %c2 = arith.constant 2 : index
    %10 = memref.load %arg1[%c2] : memref<8xi32, #tpu.memory_space<smem>>
    %c63_i32_4 = arith.constant 63 : i32
    %11 = arith.minsi %10, %c63_i32_4 : i32
    %c0_i32_5 = arith.constant 0 : i32
    %12 = arith.maxsi %11, %c0_i32_5 : i32
    %13 = arith.index_cast %12 : i32 to index
    %c0_6 = arith.constant 0 : index
    %14 = vector.load %arg2[%13, %c0_6] : memref<64x128xf32, #tpu.memory_space<vmem>>, vector<1x128xf32>
    %c3 = arith.constant 3 : index
    %15 = memref.load %arg1[%c3] : memref<8xi32, #tpu.memory_space<smem>>
    %c63_i32_7 = arith.constant 63 : i32
    %16 = arith.minsi %15, %c63_i32_7 : i32
    %c0_i32_8 = arith.constant 0 : i32
    %17 = arith.maxsi %16, %c0_i32_8 : i32
    %18 = arith.index_cast %17 : i32 to index
    %c0_9 = arith.constant 0 : index
    %19 = vector.load %arg2[%18, %c0_9] : memref<64x128xf32, #tpu.memory_space<vmem>>, vector<1x128xf32>
    %c4 = arith.constant 4 : index
    %20 = memref.load %arg1[%c4] : memref<8xi32, #tpu.memory_space<smem>>
    %c63_i32_10 = arith.constant 63 : i32
    %21 = arith.minsi %20, %c63_i32_10 : i32
    %c0_i32_11 = arith.constant 0 : i32
    %22 = arith.maxsi %21, %c0_i32_11 : i32
    %23 = arith.index_cast %22 : i32 to index
    %c0_12 = arith.constant 0 : index
    %24 = vector.load %arg2[%23, %c0_12] : memref<64x128xf32, #tpu.memory_space<vmem>>, vector<1x128xf32>
    %c5 = arith.constant 5 : index
    %25 = memref.load %arg1[%c5] : memref<8xi32, #tpu.memory_space<smem>>
    %c63_i32_13 = arith.constant 63 : i32
    %26 = arith.minsi %25, %c63_i32_13 : i32
    %c0_i32_14 = arith.constant 0 : i32
    %27 = arith.maxsi %26, %c0_i32_14 : i32
    %28 = arith.index_cast %27 : i32 to index
    %c0_15 = arith.constant 0 : index
    %29 = vector.load %arg2[%28, %c0_15] : memref<64x128xf32, #tpu.memory_space<vmem>>, vector<1x128xf32>
    %c6 = arith.constant 6 : index
    %30 = memref.load %arg1[%c6] : memref<8xi32, #tpu.memory_space<smem>>
    %c63_i32_16 = arith.constant 63 : i32
    %31 = arith.minsi %30, %c63_i32_16 : i32
    %c0_i32_17 = arith.constant 0 : i32
    %32 = arith.maxsi %31, %c0_i32_17 : i32
    %33 = arith.index_cast %32 : i32 to index
    %c0_18 = arith.constant 0 : index
    %34 = vector.load %arg2[%33, %c0_18] : memref<64x128xf32, #tpu.memory_space<vmem>>, vector<1x128xf32>
    %c7 = arith.constant 7 : index
    %35 = memref.load %arg1[%c7] : memref<8xi32, #tpu.memory_space<smem>>
    %c63_i32_19 = arith.constant 63 : i32
    %36 = arith.minsi %35, %c63_i32_19 : i32
    %c0_i32_20 = arith.constant 0 : i32
    %37 = arith.maxsi %36, %c0_i32_20 : i32
    %38 = arith.index_cast %37 : i32 to index
    %c0_21 = arith.constant 0 : index
    %39 = vector.load %arg2[%38, %c0_21] : memref<64x128xf32, #tpu.memory_space<vmem>>, vector<1x128xf32>
    %40 = tpu.concatenate %4, %9, %14, %19, %24, %29, %34, %39 in 0 : vector<1x128xf32>, vector<1x128xf32>, vector<1x128xf32>, vector<1x128xf32>, vector<1x128xf32>, vector<1x128xf32>, vector<1x128xf32>, vector<1x128xf32> -> vector<8x128xf32>
    %cst = arith.constant 0.000000e+00 : f32
    %41 = vector.broadcast %cst : f32 to vector<8x128xf32>
    %42 = arith.maximumf %40, %41 : vector<8x128xf32>
    %c0_22 = arith.constant 0 : index
    %c0_23 = arith.constant 0 : index
    %43 = vector.load %arg4[%c0_22, %c0_23] : memref<128x384xf32, #tpu.memory_space<vmem>>, vector<128x384xf32>
    %cst_24 = arith.constant dense<0.000000e+00> : vector<8x384xf32>
    %44 = tpu.matmul %42, %43, %cst_24 {dimension_numbers = #tpu.dot_dimension_numbers<[1], [0], [0], [1], [0, 0, 1, 1], [], []>} : vector<8x128xf32>, vector<128x384xf32>, vector<8x384xf32> -> vector<8x384xf32>
    %c0_25 = arith.constant 0 : index
    %c0_26 = arith.constant 0 : index
    %45 = vector.load %arg5[%c0_25, %c0_26] : memref<1x384xf32, #tpu.memory_space<vmem>>, vector<1x384xf32>
    %46 = vector.broadcast %45 : vector<1x384xf32> to vector<8x384xf32>
    %47 = arith.addf %44, %46 : vector<8x384xf32>
    %48 = vector.extract_strided_slice %47 {offsets = [0, 0], sizes = [8, 128], strides = [1, 1]} : vector<8x384xf32> to vector<8x128xf32>
    %49 = vector.extract_strided_slice %47 {offsets = [0, 128], sizes = [8, 128], strides = [1, 1]} : vector<8x384xf32> to vector<8x128xf32>
    %50 = vector.extract_strided_slice %47 {offsets = [0, 256], sizes = [8, 128], strides = [1, 1]} : vector<8x384xf32> to vector<8x128xf32>
    %c0_27 = arith.constant 0 : index
    %c0_28 = arith.constant 0 : index
    %51 = vector.load %arg3[%c0_27, %c0_28] : memref<1x128xf32, #tpu.memory_space<vmem>>, vector<1x128xf32>
    %c0_29 = arith.constant 0 : index
    %c0_30 = arith.constant 0 : index
    %52 = vector.load %arg6[%c0_29, %c0_30] : memref<128x384xf32, #tpu.memory_space<vmem>>, vector<128x384xf32>
    %cst_31 = arith.constant dense<0.000000e+00> : vector<1x384xf32>
    %53 = tpu.matmul %51, %52, %cst_31 {dimension_numbers = #tpu.dot_dimension_numbers<[1], [0], [0], [1], [0, 0, 1, 1], [], []>} : vector<1x128xf32>, vector<128x384xf32>, vector<1x384xf32> -> vector<1x384xf32>
    %c0_32 = arith.constant 0 : index
    %c0_33 = arith.constant 0 : index
    %54 = vector.load %arg7[%c0_32, %c0_33] : memref<1x384xf32, #tpu.memory_space<vmem>>, vector<1x384xf32>
    %55 = arith.addf %53, %54 : vector<1x384xf32>
    %56 = vector.extract_strided_slice %48 {offsets = [0, 0], sizes = [1, 128], strides = [1, 1]} : vector<8x128xf32> to vector<1x128xf32>
    %57 = vector.extract_strided_slice %55 {offsets = [0, 0], sizes = [1, 128], strides = [1, 1]} : vector<1x384xf32> to vector<1x128xf32>
    %58 = arith.addf %56, %57 : vector<1x128xf32>
    %59 = arith.negf %58 : vector<1x128xf32>
    %60 = math.exp %59 : vector<1x128xf32>
    %cst_34 = arith.constant 1.000000e+00 : f32
    %61 = vector.broadcast %cst_34 : f32 to vector<1x128xf32>
    %62 = arith.addf %61, %60 : vector<1x128xf32>
    %63 = arith.divf %61, %62 : vector<1x128xf32>
    %64 = vector.extract_strided_slice %49 {offsets = [0, 0], sizes = [1, 128], strides = [1, 1]} : vector<8x128xf32> to vector<1x128xf32>
    %65 = vector.extract_strided_slice %55 {offsets = [0, 128], sizes = [1, 128], strides = [1, 1]} : vector<1x384xf32> to vector<1x128xf32>
    %66 = arith.addf %64, %65 : vector<1x128xf32>
    %67 = arith.negf %66 : vector<1x128xf32>
    %68 = math.exp %67 : vector<1x128xf32>
    %cst_35 = arith.constant 1.000000e+00 : f32
    %69 = vector.broadcast %cst_35 : f32 to vector<1x128xf32>
    %70 = arith.addf %69, %68 : vector<1x128xf32>
    %71 = arith.divf %69, %70 : vector<1x128xf32>
    %72 = vector.extract_strided_slice %50 {offsets = [0, 0], sizes = [1, 128], strides = [1, 1]} : vector<8x128xf32> to vector<1x128xf32>
    %73 = vector.extract_strided_slice %55 {offsets = [0, 256], sizes = [1, 128], strides = [1, 1]} : vector<1x384xf32> to vector<1x128xf32>
    %74 = arith.mulf %63, %73 : vector<1x128xf32>
    %75 = arith.addf %72, %74 : vector<1x128xf32>
    %76 = math.tanh %75 : vector<1x128xf32>
    %cst_36 = arith.constant 1.000000e+00 : f32
    %77 = vector.broadcast %cst_36 : f32 to vector<1x128xf32>
    %78 = arith.subf %77, %71 : vector<1x128xf32>
    %79 = arith.mulf %78, %76 : vector<1x128xf32>
    %80 = arith.mulf %71, %51 : vector<1x128xf32>
    %81 = arith.addf %79, %80 : vector<1x128xf32>
    %c0_37 = arith.constant 0 : index
    %c0_38 = arith.constant 0 : index
    %82 = vector.load %arg6[%c0_37, %c0_38] : memref<128x384xf32, #tpu.memory_space<vmem>>, vector<128x384xf32>
    %cst_39 = arith.constant dense<0.000000e+00> : vector<1x384xf32>
    %83 = tpu.matmul %81, %82, %cst_39 {dimension_numbers = #tpu.dot_dimension_numbers<[1], [0], [0], [1], [0, 0, 1, 1], [], []>} : vector<1x128xf32>, vector<128x384xf32>, vector<1x384xf32> -> vector<1x384xf32>
    %c0_40 = arith.constant 0 : index
    %c0_41 = arith.constant 0 : index
    %84 = vector.load %arg7[%c0_40, %c0_41] : memref<1x384xf32, #tpu.memory_space<vmem>>, vector<1x384xf32>
    %85 = arith.addf %83, %84 : vector<1x384xf32>
    %86 = vector.extract_strided_slice %48 {offsets = [1, 0], sizes = [1, 128], strides = [1, 1]} : vector<8x128xf32> to vector<1x128xf32>
    %87 = vector.extract_strided_slice %85 {offsets = [0, 0], sizes = [1, 128], strides = [1, 1]} : vector<1x384xf32> to vector<1x128xf32>
    %88 = arith.addf %86, %87 : vector<1x128xf32>
    %89 = arith.negf %88 : vector<1x128xf32>
    %90 = math.exp %89 : vector<1x128xf32>
    %cst_42 = arith.constant 1.000000e+00 : f32
    %91 = vector.broadcast %cst_42 : f32 to vector<1x128xf32>
    %92 = arith.addf %91, %90 : vector<1x128xf32>
    %93 = arith.divf %91, %92 : vector<1x128xf32>
    %94 = vector.extract_strided_slice %49 {offsets = [1, 0], sizes = [1, 128], strides = [1, 1]} : vector<8x128xf32> to vector<1x128xf32>
    %95 = vector.extract_strided_slice %85 {offsets = [0, 128], sizes = [1, 128], strides = [1, 1]} : vector<1x384xf32> to vector<1x128xf32>
    %96 = arith.addf %94, %95 : vector<1x128xf32>
    %97 = arith.negf %96 : vector<1x128xf32>
    %98 = math.exp %97 : vector<1x128xf32>
    %cst_43 = arith.constant 1.000000e+00 : f32
    %99 = vector.broadcast %cst_43 : f32 to vector<1x128xf32>
    %100 = arith.addf %99, %98 : vector<1x128xf32>
    %101 = arith.divf %99, %100 : vector<1x128xf32>
    %102 = vector.extract_strided_slice %50 {offsets = [1, 0], sizes = [1, 128], strides = [1, 1]} : vector<8x128xf32> to vector<1x128xf32>
    %103 = vector.extract_strided_slice %85 {offsets = [0, 256], sizes = [1, 128], strides = [1, 1]} : vector<1x384xf32> to vector<1x128xf32>
    %104 = arith.mulf %93, %103 : vector<1x128xf32>
    %105 = arith.addf %102, %104 : vector<1x128xf32>
    %106 = math.tanh %105 : vector<1x128xf32>
    %cst_44 = arith.constant 1.000000e+00 : f32
    %107 = vector.broadcast %cst_44 : f32 to vector<1x128xf32>
    %108 = arith.subf %107, %101 : vector<1x128xf32>
    %109 = arith.mulf %108, %106 : vector<1x128xf32>
    %110 = arith.mulf %101, %81 : vector<1x128xf32>
    %111 = arith.addf %109, %110 : vector<1x128xf32>
    %c0_45 = arith.constant 0 : index
    %c0_46 = arith.constant 0 : index
    %112 = vector.load %arg6[%c0_45, %c0_46] : memref<128x384xf32, #tpu.memory_space<vmem>>, vector<128x384xf32>
    %cst_47 = arith.constant dense<0.000000e+00> : vector<1x384xf32>
    %113 = tpu.matmul %111, %112, %cst_47 {dimension_numbers = #tpu.dot_dimension_numbers<[1], [0], [0], [1], [0, 0, 1, 1], [], []>} : vector<1x128xf32>, vector<128x384xf32>, vector<1x384xf32> -> vector<1x384xf32>
    %c0_48 = arith.constant 0 : index
    %c0_49 = arith.constant 0 : index
    %114 = vector.load %arg7[%c0_48, %c0_49] : memref<1x384xf32, #tpu.memory_space<vmem>>, vector<1x384xf32>
    %115 = arith.addf %113, %114 : vector<1x384xf32>
    %116 = vector.extract_strided_slice %48 {offsets = [2, 0], sizes = [1, 128], strides = [1, 1]} : vector<8x128xf32> to vector<1x128xf32>
    %117 = vector.extract_strided_slice %115 {offsets = [0, 0], sizes = [1, 128], strides = [1, 1]} : vector<1x384xf32> to vector<1x128xf32>
    %118 = arith.addf %116, %117 : vector<1x128xf32>
    %119 = arith.negf %118 : vector<1x128xf32>
    %120 = math.exp %119 : vector<1x128xf32>
    %cst_50 = arith.constant 1.000000e+00 : f32
    %121 = vector.broadcast %cst_50 : f32 to vector<1x128xf32>
    %122 = arith.addf %121, %120 : vector<1x128xf32>
    %123 = arith.divf %121, %122 : vector<1x128xf32>
    %124 = vector.extract_strided_slice %49 {offsets = [2, 0], sizes = [1, 128], strides = [1, 1]} : vector<8x128xf32> to vector<1x128xf32>
    %125 = vector.extract_strided_slice %115 {offsets = [0, 128], sizes = [1, 128], strides = [1, 1]} : vector<1x384xf32> to vector<1x128xf32>
    %126 = arith.addf %124, %125 : vector<1x128xf32>
    %127 = arith.negf %126 : vector<1x128xf32>
    %128 = math.exp %127 : vector<1x128xf32>
    %cst_51 = arith.constant 1.000000e+00 : f32
    %129 = vector.broadcast %cst_51 : f32 to vector<1x128xf32>
    %130 = arith.addf %129, %128 : vector<1x128xf32>
    %131 = arith.divf %129, %130 : vector<1x128xf32>
    %132 = vector.extract_strided_slice %50 {offsets = [2, 0], sizes = [1, 128], strides = [1, 1]} : vector<8x128xf32> to vector<1x128xf32>
    %133 = vector.extract_strided_slice %115 {offsets = [0, 256], sizes = [1, 128], strides = [1, 1]} : vector<1x384xf32> to vector<1x128xf32>
    %134 = arith.mulf %123, %133 : vector<1x128xf32>
    %135 = arith.addf %132, %134 : vector<1x128xf32>
    %136 = math.tanh %135 : vector<1x128xf32>
    %cst_52 = arith.constant 1.000000e+00 : f32
    %137 = vector.broadcast %cst_52 : f32 to vector<1x128xf32>
    %138 = arith.subf %137, %131 : vector<1x128xf32>
    %139 = arith.mulf %138, %136 : vector<1x128xf32>
    %140 = arith.mulf %131, %111 : vector<1x128xf32>
    %141 = arith.addf %139, %140 : vector<1x128xf32>
    %c0_53 = arith.constant 0 : index
    %c0_54 = arith.constant 0 : index
    %142 = vector.load %arg6[%c0_53, %c0_54] : memref<128x384xf32, #tpu.memory_space<vmem>>, vector<128x384xf32>
    %cst_55 = arith.constant dense<0.000000e+00> : vector<1x384xf32>
    %143 = tpu.matmul %141, %142, %cst_55 {dimension_numbers = #tpu.dot_dimension_numbers<[1], [0], [0], [1], [0, 0, 1, 1], [], []>} : vector<1x128xf32>, vector<128x384xf32>, vector<1x384xf32> -> vector<1x384xf32>
    %c0_56 = arith.constant 0 : index
    %c0_57 = arith.constant 0 : index
    %144 = vector.load %arg7[%c0_56, %c0_57] : memref<1x384xf32, #tpu.memory_space<vmem>>, vector<1x384xf32>
    %145 = arith.addf %143, %144 : vector<1x384xf32>
    %146 = vector.extract_strided_slice %48 {offsets = [3, 0], sizes = [1, 128], strides = [1, 1]} : vector<8x128xf32> to vector<1x128xf32>
    %147 = vector.extract_strided_slice %145 {offsets = [0, 0], sizes = [1, 128], strides = [1, 1]} : vector<1x384xf32> to vector<1x128xf32>
    %148 = arith.addf %146, %147 : vector<1x128xf32>
    %149 = arith.negf %148 : vector<1x128xf32>
    %150 = math.exp %149 : vector<1x128xf32>
    %cst_58 = arith.constant 1.000000e+00 : f32
    %151 = vector.broadcast %cst_58 : f32 to vector<1x128xf32>
    %152 = arith.addf %151, %150 : vector<1x128xf32>
    %153 = arith.divf %151, %152 : vector<1x128xf32>
    %154 = vector.extract_strided_slice %49 {offsets = [3, 0], sizes = [1, 128], strides = [1, 1]} : vector<8x128xf32> to vector<1x128xf32>
    %155 = vector.extract_strided_slice %145 {offsets = [0, 128], sizes = [1, 128], strides = [1, 1]} : vector<1x384xf32> to vector<1x128xf32>
    %156 = arith.addf %154, %155 : vector<1x128xf32>
    %157 = arith.negf %156 : vector<1x128xf32>
    %158 = math.exp %157 : vector<1x128xf32>
    %cst_59 = arith.constant 1.000000e+00 : f32
    %159 = vector.broadcast %cst_59 : f32 to vector<1x128xf32>
    %160 = arith.addf %159, %158 : vector<1x128xf32>
    %161 = arith.divf %159, %160 : vector<1x128xf32>
    %162 = vector.extract_strided_slice %50 {offsets = [3, 0], sizes = [1, 128], strides = [1, 1]} : vector<8x128xf32> to vector<1x128xf32>
    %163 = vector.extract_strided_slice %145 {offsets = [0, 256], sizes = [1, 128], strides = [1, 1]} : vector<1x384xf32> to vector<1x128xf32>
    %164 = arith.mulf %153, %163 : vector<1x128xf32>
    %165 = arith.addf %162, %164 : vector<1x128xf32>
    %166 = math.tanh %165 : vector<1x128xf32>
    %cst_60 = arith.constant 1.000000e+00 : f32
    %167 = vector.broadcast %cst_60 : f32 to vector<1x128xf32>
    %168 = arith.subf %167, %161 : vector<1x128xf32>
    %169 = arith.mulf %168, %166 : vector<1x128xf32>
    %170 = arith.mulf %161, %141 : vector<1x128xf32>
    %171 = arith.addf %169, %170 : vector<1x128xf32>
    %c0_61 = arith.constant 0 : index
    %c0_62 = arith.constant 0 : index
    %172 = vector.load %arg6[%c0_61, %c0_62] : memref<128x384xf32, #tpu.memory_space<vmem>>, vector<128x384xf32>
    %cst_63 = arith.constant dense<0.000000e+00> : vector<1x384xf32>
    %173 = tpu.matmul %171, %172, %cst_63 {dimension_numbers = #tpu.dot_dimension_numbers<[1], [0], [0], [1], [0, 0, 1, 1], [], []>} : vector<1x128xf32>, vector<128x384xf32>, vector<1x384xf32> -> vector<1x384xf32>
    %c0_64 = arith.constant 0 : index
    %c0_65 = arith.constant 0 : index
    %174 = vector.load %arg7[%c0_64, %c0_65] : memref<1x384xf32, #tpu.memory_space<vmem>>, vector<1x384xf32>
    %175 = arith.addf %173, %174 : vector<1x384xf32>
    %176 = vector.extract_strided_slice %48 {offsets = [4, 0], sizes = [1, 128], strides = [1, 1]} : vector<8x128xf32> to vector<1x128xf32>
    %177 = vector.extract_strided_slice %175 {offsets = [0, 0], sizes = [1, 128], strides = [1, 1]} : vector<1x384xf32> to vector<1x128xf32>
    %178 = arith.addf %176, %177 : vector<1x128xf32>
    %179 = arith.negf %178 : vector<1x128xf32>
    %180 = math.exp %179 : vector<1x128xf32>
    %cst_66 = arith.constant 1.000000e+00 : f32
    %181 = vector.broadcast %cst_66 : f32 to vector<1x128xf32>
    %182 = arith.addf %181, %180 : vector<1x128xf32>
    %183 = arith.divf %181, %182 : vector<1x128xf32>
    %184 = vector.extract_strided_slice %49 {offsets = [4, 0], sizes = [1, 128], strides = [1, 1]} : vector<8x128xf32> to vector<1x128xf32>
    %185 = vector.extract_strided_slice %175 {offsets = [0, 128], sizes = [1, 128], strides = [1, 1]} : vector<1x384xf32> to vector<1x128xf32>
    %186 = arith.addf %184, %185 : vector<1x128xf32>
    %187 = arith.negf %186 : vector<1x128xf32>
    %188 = math.exp %187 : vector<1x128xf32>
    %cst_67 = arith.constant 1.000000e+00 : f32
    %189 = vector.broadcast %cst_67 : f32 to vector<1x128xf32>
    %190 = arith.addf %189, %188 : vector<1x128xf32>
    %191 = arith.divf %189, %190 : vector<1x128xf32>
    %192 = vector.extract_strided_slice %50 {offsets = [4, 0], sizes = [1, 128], strides = [1, 1]} : vector<8x128xf32> to vector<1x128xf32>
    %193 = vector.extract_strided_slice %175 {offsets = [0, 256], sizes = [1, 128], strides = [1, 1]} : vector<1x384xf32> to vector<1x128xf32>
    %194 = arith.mulf %183, %193 : vector<1x128xf32>
    %195 = arith.addf %192, %194 : vector<1x128xf32>
    %196 = math.tanh %195 : vector<1x128xf32>
    %cst_68 = arith.constant 1.000000e+00 : f32
    %197 = vector.broadcast %cst_68 : f32 to vector<1x128xf32>
    %198 = arith.subf %197, %191 : vector<1x128xf32>
    %199 = arith.mulf %198, %196 : vector<1x128xf32>
    %200 = arith.mulf %191, %171 : vector<1x128xf32>
    %201 = arith.addf %199, %200 : vector<1x128xf32>
    %c0_69 = arith.constant 0 : index
    %c0_70 = arith.constant 0 : index
    %202 = vector.load %arg6[%c0_69, %c0_70] : memref<128x384xf32, #tpu.memory_space<vmem>>, vector<128x384xf32>
    %cst_71 = arith.constant dense<0.000000e+00> : vector<1x384xf32>
    %203 = tpu.matmul %201, %202, %cst_71 {dimension_numbers = #tpu.dot_dimension_numbers<[1], [0], [0], [1], [0, 0, 1, 1], [], []>} : vector<1x128xf32>, vector<128x384xf32>, vector<1x384xf32> -> vector<1x384xf32>
    %c0_72 = arith.constant 0 : index
    %c0_73 = arith.constant 0 : index
    %204 = vector.load %arg7[%c0_72, %c0_73] : memref<1x384xf32, #tpu.memory_space<vmem>>, vector<1x384xf32>
    %205 = arith.addf %203, %204 : vector<1x384xf32>
    %206 = vector.extract_strided_slice %48 {offsets = [5, 0], sizes = [1, 128], strides = [1, 1]} : vector<8x128xf32> to vector<1x128xf32>
    %207 = vector.extract_strided_slice %205 {offsets = [0, 0], sizes = [1, 128], strides = [1, 1]} : vector<1x384xf32> to vector<1x128xf32>
    %208 = arith.addf %206, %207 : vector<1x128xf32>
    %209 = arith.negf %208 : vector<1x128xf32>
    %210 = math.exp %209 : vector<1x128xf32>
    %cst_74 = arith.constant 1.000000e+00 : f32
    %211 = vector.broadcast %cst_74 : f32 to vector<1x128xf32>
    %212 = arith.addf %211, %210 : vector<1x128xf32>
    %213 = arith.divf %211, %212 : vector<1x128xf32>
    %214 = vector.extract_strided_slice %49 {offsets = [5, 0], sizes = [1, 128], strides = [1, 1]} : vector<8x128xf32> to vector<1x128xf32>
    %215 = vector.extract_strided_slice %205 {offsets = [0, 128], sizes = [1, 128], strides = [1, 1]} : vector<1x384xf32> to vector<1x128xf32>
    %216 = arith.addf %214, %215 : vector<1x128xf32>
    %217 = arith.negf %216 : vector<1x128xf32>
    %218 = math.exp %217 : vector<1x128xf32>
    %cst_75 = arith.constant 1.000000e+00 : f32
    %219 = vector.broadcast %cst_75 : f32 to vector<1x128xf32>
    %220 = arith.addf %219, %218 : vector<1x128xf32>
    %221 = arith.divf %219, %220 : vector<1x128xf32>
    %222 = vector.extract_strided_slice %50 {offsets = [5, 0], sizes = [1, 128], strides = [1, 1]} : vector<8x128xf32> to vector<1x128xf32>
    %223 = vector.extract_strided_slice %205 {offsets = [0, 256], sizes = [1, 128], strides = [1, 1]} : vector<1x384xf32> to vector<1x128xf32>
    %224 = arith.mulf %213, %223 : vector<1x128xf32>
    %225 = arith.addf %222, %224 : vector<1x128xf32>
    %226 = math.tanh %225 : vector<1x128xf32>
    %cst_76 = arith.constant 1.000000e+00 : f32
    %227 = vector.broadcast %cst_76 : f32 to vector<1x128xf32>
    %228 = arith.subf %227, %221 : vector<1x128xf32>
    %229 = arith.mulf %228, %226 : vector<1x128xf32>
    %230 = arith.mulf %221, %201 : vector<1x128xf32>
    %231 = arith.addf %229, %230 : vector<1x128xf32>
    %c0_77 = arith.constant 0 : index
    %c0_78 = arith.constant 0 : index
    %232 = vector.load %arg6[%c0_77, %c0_78] : memref<128x384xf32, #tpu.memory_space<vmem>>, vector<128x384xf32>
    %cst_79 = arith.constant dense<0.000000e+00> : vector<1x384xf32>
    %233 = tpu.matmul %231, %232, %cst_79 {dimension_numbers = #tpu.dot_dimension_numbers<[1], [0], [0], [1], [0, 0, 1, 1], [], []>} : vector<1x128xf32>, vector<128x384xf32>, vector<1x384xf32> -> vector<1x384xf32>
    %c0_80 = arith.constant 0 : index
    %c0_81 = arith.constant 0 : index
    %234 = vector.load %arg7[%c0_80, %c0_81] : memref<1x384xf32, #tpu.memory_space<vmem>>, vector<1x384xf32>
    %235 = arith.addf %233, %234 : vector<1x384xf32>
    %236 = vector.extract_strided_slice %48 {offsets = [6, 0], sizes = [1, 128], strides = [1, 1]} : vector<8x128xf32> to vector<1x128xf32>
    %237 = vector.extract_strided_slice %235 {offsets = [0, 0], sizes = [1, 128], strides = [1, 1]} : vector<1x384xf32> to vector<1x128xf32>
    %238 = arith.addf %236, %237 : vector<1x128xf32>
    %239 = arith.negf %238 : vector<1x128xf32>
    %240 = math.exp %239 : vector<1x128xf32>
    %cst_82 = arith.constant 1.000000e+00 : f32
    %241 = vector.broadcast %cst_82 : f32 to vector<1x128xf32>
    %242 = arith.addf %241, %240 : vector<1x128xf32>
    %243 = arith.divf %241, %242 : vector<1x128xf32>
    %244 = vector.extract_strided_slice %49 {offsets = [6, 0], sizes = [1, 128], strides = [1, 1]} : vector<8x128xf32> to vector<1x128xf32>
    %245 = vector.extract_strided_slice %235 {offsets = [0, 128], sizes = [1, 128], strides = [1, 1]} : vector<1x384xf32> to vector<1x128xf32>
    %246 = arith.addf %244, %245 : vector<1x128xf32>
    %247 = arith.negf %246 : vector<1x128xf32>
    %248 = math.exp %247 : vector<1x128xf32>
    %cst_83 = arith.constant 1.000000e+00 : f32
    %249 = vector.broadcast %cst_83 : f32 to vector<1x128xf32>
    %250 = arith.addf %249, %248 : vector<1x128xf32>
    %251 = arith.divf %249, %250 : vector<1x128xf32>
    %252 = vector.extract_strided_slice %50 {offsets = [6, 0], sizes = [1, 128], strides = [1, 1]} : vector<8x128xf32> to vector<1x128xf32>
    %253 = vector.extract_strided_slice %235 {offsets = [0, 256], sizes = [1, 128], strides = [1, 1]} : vector<1x384xf32> to vector<1x128xf32>
    %254 = arith.mulf %243, %253 : vector<1x128xf32>
    %255 = arith.addf %252, %254 : vector<1x128xf32>
    %256 = math.tanh %255 : vector<1x128xf32>
    %cst_84 = arith.constant 1.000000e+00 : f32
    %257 = vector.broadcast %cst_84 : f32 to vector<1x128xf32>
    %258 = arith.subf %257, %251 : vector<1x128xf32>
    %259 = arith.mulf %258, %256 : vector<1x128xf32>
    %260 = arith.mulf %251, %231 : vector<1x128xf32>
    %261 = arith.addf %259, %260 : vector<1x128xf32>
    %c0_85 = arith.constant 0 : index
    %c0_86 = arith.constant 0 : index
    %262 = vector.load %arg6[%c0_85, %c0_86] : memref<128x384xf32, #tpu.memory_space<vmem>>, vector<128x384xf32>
    %cst_87 = arith.constant dense<0.000000e+00> : vector<1x384xf32>
    %263 = tpu.matmul %261, %262, %cst_87 {dimension_numbers = #tpu.dot_dimension_numbers<[1], [0], [0], [1], [0, 0, 1, 1], [], []>} : vector<1x128xf32>, vector<128x384xf32>, vector<1x384xf32> -> vector<1x384xf32>
    %c0_88 = arith.constant 0 : index
    %c0_89 = arith.constant 0 : index
    %264 = vector.load %arg7[%c0_88, %c0_89] : memref<1x384xf32, #tpu.memory_space<vmem>>, vector<1x384xf32>
    %265 = arith.addf %263, %264 : vector<1x384xf32>
    %266 = vector.extract_strided_slice %48 {offsets = [7, 0], sizes = [1, 128], strides = [1, 1]} : vector<8x128xf32> to vector<1x128xf32>
    %267 = vector.extract_strided_slice %265 {offsets = [0, 0], sizes = [1, 128], strides = [1, 1]} : vector<1x384xf32> to vector<1x128xf32>
    %268 = arith.addf %266, %267 : vector<1x128xf32>
    %269 = arith.negf %268 : vector<1x128xf32>
    %270 = math.exp %269 : vector<1x128xf32>
    %cst_90 = arith.constant 1.000000e+00 : f32
    %271 = vector.broadcast %cst_90 : f32 to vector<1x128xf32>
    %272 = arith.addf %271, %270 : vector<1x128xf32>
    %273 = arith.divf %271, %272 : vector<1x128xf32>
    %274 = vector.extract_strided_slice %49 {offsets = [7, 0], sizes = [1, 128], strides = [1, 1]} : vector<8x128xf32> to vector<1x128xf32>
    %275 = vector.extract_strided_slice %265 {offsets = [0, 128], sizes = [1, 128], strides = [1, 1]} : vector<1x384xf32> to vector<1x128xf32>
    %276 = arith.addf %274, %275 : vector<1x128xf32>
    %277 = arith.negf %276 : vector<1x128xf32>
    %278 = math.exp %277 : vector<1x128xf32>
    %cst_91 = arith.constant 1.000000e+00 : f32
    %279 = vector.broadcast %cst_91 : f32 to vector<1x128xf32>
    %280 = arith.addf %279, %278 : vector<1x128xf32>
    %281 = arith.divf %279, %280 : vector<1x128xf32>
    %282 = vector.extract_strided_slice %50 {offsets = [7, 0], sizes = [1, 128], strides = [1, 1]} : vector<8x128xf32> to vector<1x128xf32>
    %283 = vector.extract_strided_slice %265 {offsets = [0, 256], sizes = [1, 128], strides = [1, 1]} : vector<1x384xf32> to vector<1x128xf32>
    %284 = arith.mulf %273, %283 : vector<1x128xf32>
    %285 = arith.addf %282, %284 : vector<1x128xf32>
    %286 = math.tanh %285 : vector<1x128xf32>
    %cst_92 = arith.constant 1.000000e+00 : f32
    %287 = vector.broadcast %cst_92 : f32 to vector<1x128xf32>
    %288 = arith.subf %287, %281 : vector<1x128xf32>
    %289 = arith.mulf %288, %286 : vector<1x128xf32>
    %290 = arith.mulf %281, %261 : vector<1x128xf32>
    %291 = arith.addf %289, %290 : vector<1x128xf32>
    %c0_93 = arith.constant 0 : index
    %c0_94 = arith.constant 0 : index
    %292 = vector.load %arg11[%c0_93, %c0_94] : memref<1x128xf32, #tpu.memory_space<vmem>>, vector<1x128xf32>
    tpu.vector_store %arg11[%c0_93, %c0_94], %291 {strides = array<i32>} : memref<1x128xf32, #tpu.memory_space<vmem>>, vector<1x128xf32>,
    %293 = tpu.concatenate %81, %111, %141, %171, %201, %231, %261, %291 in 0 : vector<1x128xf32>, vector<1x128xf32>, vector<1x128xf32>, vector<1x128xf32>, vector<1x128xf32>, vector<1x128xf32>, vector<1x128xf32>, vector<1x128xf32> -> vector<8x128xf32>
    %c0_95 = arith.constant 0 : index
    %c0_96 = arith.constant 0 : index
    %294 = vector.load %arg8[%c0_95, %c0_96] : memref<128x128xf32, #tpu.memory_space<vmem>>, vector<128x128xf32>
    %cst_97 = arith.constant dense<0.000000e+00> : vector<8x128xf32>
    %295 = tpu.matmul %293, %294, %cst_97 {dimension_numbers = #tpu.dot_dimension_numbers<[1], [0], [0], [1], [0, 0, 1, 1], [], []>} : vector<8x128xf32>, vector<128x128xf32>, vector<8x128xf32> -> vector<8x128xf32>
    %c0_98 = arith.constant 0 : index
    %c0_99 = arith.constant 0 : index
    %296 = vector.load %arg9[%c0_98, %c0_99] : memref<1x128xf32, #tpu.memory_space<vmem>>, vector<1x128xf32>
    %297 = vector.broadcast %296 : vector<1x128xf32> to vector<8x128xf32>
    %298 = arith.addf %295, %297 : vector<8x128xf32>
    %299 = tpu.iota {dimensions = array<i32: 1>} : vector<8x128xi32>
    %c64_i32 = arith.constant 64 : i32
    %300 = vector.broadcast %c64_i32 : i32 to vector<8x128xi32>
    %301 = arith.cmpi slt, %299, %300 : vector<8x128xi32>
    %cst_100 = arith.constant -1.000000e+30 : f32
    %302 = vector.broadcast %cst_100 : f32 to vector<8x128xf32>
    %303 = arith.select %301, %298, %302 : vector<8x128xi1>, vector<8x128xf32>
    %cst_101 = arith.constant dense<0xFF800000> : vector<8xf32>
    %304 = vector.multi_reduction <maximumf>, %303, %cst_101 [1] : vector<8x128xf32> to vector<8xf32>
    %305 = vector.shape_cast %304 : vector<8xf32> to vector<8x1xf32>
    %306 = vector.broadcast %305 : vector<8x1xf32> to vector<8x128xf32>
    %307 = arith.subf %303, %306 : vector<8x128xf32>
    %308 = math.exp %307 : vector<8x128xf32>
    %cst_102 = arith.constant dense<0.000000e+00> : vector<8xf32>
    %309 = vector.multi_reduction <add>, %308, %cst_102 [1] : vector<8x128xf32> to vector<8xf32>
    %310 = vector.shape_cast %309 : vector<8xf32> to vector<8x1xf32>
    %311 = math.log %310 : vector<8x1xf32>
    %312 = vector.broadcast %311 : vector<8x1xf32> to vector<8x128xf32>
    %313 = arith.subf %307, %312 : vector<8x128xf32>
    %c0_103 = arith.constant 0 : index
    %c0_104 = arith.constant 0 : index
    %314 = vector.load %arg10[%c0_103, %c0_104] : memref<8x128xf32, #tpu.memory_space<vmem>>, vector<8x128xf32>
    tpu.vector_store %arg10[%c0_103, %c0_104], %313 {strides = array<i32>} : memref<8x128xf32, #tpu.memory_space<vmem>>, vector<8x128xf32>,
    return
  }
  func.func @transform_0(%arg0: i32, %arg1: memref<8xi32, #tpu.memory_space<smem>>) -> (i32, i32) {
    %c0_i32 = arith.constant 0 : i32
    %c0_i32_0 = arith.constant 0 : i32
    %c0_i32_1 = arith.constant 0 : i32
    return %c0_i32, %c0_i32_0 : i32, i32
  }
  func.func @transform_1(%arg0: i32, %arg1: memref<8xi32, #tpu.memory_space<smem>>) -> (i32, i32) {
    %c0_i32 = arith.constant 0 : i32
    %c0_i32_0 = arith.constant 0 : i32
    %c0_i32_1 = arith.constant 0 : i32
    return %c0_i32, %c0_i32_0 : i32, i32
  }
  func.func @transform_2(%arg0: i32, %arg1: memref<8xi32, #tpu.memory_space<smem>>) -> (i32, i32) {
    %c0_i32 = arith.constant 0 : i32
    %c0_i32_0 = arith.constant 0 : i32
    %c0_i32_1 = arith.constant 0 : i32
    return %c0_i32, %c0_i32_0 : i32, i32
  }
  func.func @transform_3(%arg0: i32, %arg1: memref<8xi32, #tpu.memory_space<smem>>) -> (i32, i32) {
    %c0_i32 = arith.constant 0 : i32
    %c0_i32_0 = arith.constant 0 : i32
    %c0_i32_1 = arith.constant 0 : i32
    return %c0_i32, %c0_i32_0 : i32, i32
  }
  func.func @transform_4(%arg0: i32, %arg1: memref<8xi32, #tpu.memory_space<smem>>) -> (i32, i32) {
    %c0_i32 = arith.constant 0 : i32
    %c0_i32_0 = arith.constant 0 : i32
    %c0_i32_1 = arith.constant 0 : i32
    return %c0_i32, %c0_i32_0 : i32, i32
  }
  func.func @transform_5(%arg0: i32, %arg1: memref<8xi32, #tpu.memory_space<smem>>) -> (i32, i32) {
    %c0_i32 = arith.constant 0 : i32
    %c0_i32_0 = arith.constant 0 : i32
    %c0_i32_1 = arith.constant 0 : i32
    return %c0_i32, %c0_i32_0 : i32, i32
  }
  func.func @transform_6(%arg0: i32, %arg1: memref<8xi32, #tpu.memory_space<smem>>) -> (i32, i32) {
    %c0_i32 = arith.constant 0 : i32
    %c0_i32_0 = arith.constant 0 : i32
    %c0_i32_1 = arith.constant 0 : i32
    return %c0_i32, %c0_i32_0 : i32, i32
  }
  func.func @transform_7(%arg0: i32, %arg1: memref<8xi32, #tpu.memory_space<smem>>) -> (i32, i32) {
    %c0_i32 = arith.constant 0 : i32
    %c0_i32_0 = arith.constant 0 : i32
    %c0_i32_1 = arith.constant 0 : i32
    return %c0_i32, %c0_i32_0 : i32, i32
  }
  func.func @transform_8(%arg0: i32, %arg1: memref<8xi32, #tpu.memory_space<smem>>) -> (i32, i32) {
    %c0_i32 = arith.constant 0 : i32
    %c0_i32_0 = arith.constant 0 : i32
    %c0_i32_1 = arith.constant 0 : i32
    return %c0_i32, %c0_i32_0 : i32, i32
  }
  func.func @transform_9(%arg0: i32, %arg1: memref<8xi32, #tpu.memory_space<smem>>) -> (i32, i32) {
    %c0_i32 = arith.constant 0 : i32
    %c0_i32_0 = arith.constant 0 : i32
    %c0_i32_1 = arith.constant 0 : i32
    return %c0_i32, %c0_i32_0 : i32, i32
  }
}

</mosaic_0001>

<bundles_post_ra>
// kernel: tpu_custom_call.1
= control target key start
LH: loop header
LB: loop body
LE: loop exit
PB: predicated region body
PF: predicated region fallthrough
CT: control target
= control target key end

     0   :  { %s2889_s13 = smov [#allocation3]   ;;  %s3945_s0 = inlined_call_operand.hbm [shape: s32[8], index: 0, kind: input, shape index: {}]   ;;  %s3946_s1 = inlined_call_operand.hbm [shape: f32[64,128], index: 1, kind: input, shape index: {}]   ;;  %s3947_s2 = inlined_call_operand.vmem [shape: f32[1,128], index: 2, kind: input, shape index: {}]   ;;  %s3948_s3 = inlined_call_operand.hbm [shape: f32[128,384], index: 3, kind: input, shape index: {}]   ;;  %s3949_s4 = inlined_call_operand.vmem [shape: f32[1,384], index: 4, kind: input, shape index: {}]   ;;  %s3950_s5 = inlined_call_operand.hbm [shape: f32[128,384], index: 5, kind: input, shape index: {}]   ;;  %s3951_s6 = inlined_call_operand.vmem [shape: f32[1,384], index: 6, kind: input, shape index: {}]   ;;  %s3952_s7 = inlined_call_operand.hbm [shape: f32[128,128], index: 7, kind: input, shape index: {}]   ;;  %s3953_s8 = inlined_call_operand.vmem [shape: f32[1,128], index: 8, kind: input, shape index: {}]   ;;  %s3954_s9 = inlined_call_operand.hbm [shape: f32[8,128], index: 9, kind: output, shape index: {0}]   ;;  %s3955_s10 = inlined_call_operand.hbm [shape: f32[1,128], index: 10, kind: output, shape index: {1}]  }
   0x1   :  { %17 = dma.hbm_to_smem %s3945_s0, 16, %s2889_s13, [#allocation2] }
   0x2   :  { %2877 = dma.done.wait [#allocation2], 16 }
   0x3   :  { %2878 = vsyncadd [#allocation2], 4294967280 }
   0x4   :  { %19 = sfence }
   0x5   :  { %20 = vsyncpa [#allocation5], 0 }
   0x6   :  { %21 = vsyncpa [#allocation8], 0 }
   0x7   :  { %22 = vsyncpa [#allocation11], 0 }
   0x8   :  { %23 = vsyncpa [#allocation6], 0 }
   0x9   :  { %24 = vsyncpa [#allocation14], 0  ;;  %s2890_s16 = smov [#allocation7]  }
   0xa   :  { %s44_s17 = sshll.u32 %s2890_s16, 4  ;;  %s45_s17 = int_to_ptr.vmem [resolvable:$true] %s44_s17 }
   0xb   :  { %s2765_s18 = scalar_lea.vmem %s45_s17, 6144  ;;  %p2770_p1 = scmp.lt.s32.totalorder %s45_s17, %s45_s17 }
   0xc   :  { %p2766_p0 = scmp.ne.s32.totalorder %s45_s17, %s2765_s18  ;;  %p2771_p2 = scmp.lt.s32.totalorder %s2765_s18, %s2765_s18 }
   0xe   :  { %p2772_p3 = por %p2771_p2, %p2770_p1 }
  0x10   :  { %p2773_p4 = pnand %p2772_p3, %p2766_p0 }
  0x12   :  { %2776 = shalt.err (!%p2773_p4)
}
  0x13   :  { %s2891_s19 = smov 384   ;;  %s2892_s0 = smov 24  }
  0x14   :  { %50 = dma.hbm_to_vmem [thread:$0]  %s3948_s3, 6144, %s45_s17, [#allocation8], %s2891_s19, %s2891_s19, %s2892_s0  }
  0x15   :  { %s2893_s22 = smov [#allocation4]  }
  0x16   :  { %s30_s23 = sshll.u32 %s2893_s22, 4  ;;  %s31_s23 = int_to_ptr.vmem [resolvable:$true] %s30_s23 }
  0x17   :  { %s2785_s24 = scalar_lea.vmem %s31_s23, 1024  ;;  %p2790_p6 = scmp.lt.s32.totalorder %s31_s23, %s31_s23 }
  0x18   :  { %p2786_p5 = scmp.ne.s32.totalorder %s31_s23, %s2785_s24  ;;  %p2791_p7 = scmp.lt.s32.totalorder %s2785_s24, %s2785_s24 }
  0x1a   :  { %p2792_p8 = por %p2791_p7, %p2790_p6 }
  0x1c   :  { %p2793_p9 = pnand %p2792_p8, %p2786_p5 }
  0x1e   :  { %2796 = shalt.err (!%p2793_p9)
}
  0x1f   :  { %s2894_s25 = smov 128   ;;  %s2895_s26 = smov 8  }
  0x20   :  { %36 = dma.hbm_to_vmem [thread:$0]  %s3946_s1, 1024, %s31_s23, [#allocation5], %s2894_s25, %s2894_s25, %s2895_s26  }
  0x21   :  { %s2896_s29 = smov [#allocation9]   ;;  %s2897_s11 = smov [#allocation10]  }
  0x22   :  { %s58_s30 = sshll.u32 %s2896_s29, 4  ;;  %s72_s3 = sshll.u32 %s2897_s11, 4  ;;  %s59_s30 = int_to_ptr.vmem [resolvable:$true] %s58_s30  ;;  %s73_s3 = int_to_ptr.vmem [resolvable:$true] %s72_s3 }
  0x23   :  { %s2805_s12 = scalar_lea.vmem %s59_s30, 6144  ;;  %p2810_p11 = scmp.lt.s32.totalorder %s59_s30, %s59_s30 }
  0x24   :  { %p2806_p10 = scmp.ne.s32.totalorder %s59_s30, %s2805_s12  ;;  %p2811_p12 = scmp.lt.s32.totalorder %s2805_s12, %s2805_s12 }
  0x26   :  { %p2812_p13 = por %p2811_p12, %p2810_p11 }
  0x28   :  { %p2813_p0 = pnand %p2812_p13, %p2806_p10 }
  0x2a   :  { %2816 = shalt.err (!%p2813_p0)
}
  0x2b   :  { %64 = dma.hbm_to_vmem [thread:$0]  %s3950_s5, 6144, %s59_s30, [#allocation8], %s2891_s19, %s2891_s19, %s2892_s0  }
  0x2c   :  { %s2825_s1 = scalar_lea.vmem %s73_s3, 2048  ;;  %p2830_p2 = scmp.lt.s32.totalorder %s73_s3, %s73_s3 }
  0x2d   :  { %p2826_p1 = scmp.ne.s32.totalorder %s73_s3, %s2825_s1  ;;  %p2831_p3 = scmp.lt.s32.totalorder %s2825_s1, %s2825_s1 }
  0x2f   :  { %p2832_p4 = por %p2831_p3, %p2830_p2 }
  0x31   :  { %p2833_p5 = pnand %p2832_p4, %p2826_p1 }
  0x33   :  { %2836 = shalt.err (!%p2833_p5)
}
  0x34   :  { %78 = dma.hbm_to_vmem [thread:$0]  %s3952_s7, 2048, %s73_s3, [#allocation11], %s2894_s25, %s2894_s25, %s2895_s26  }
  0x35   :  { %2879 = dma.done.wait [#allocation5], 1024  }
  0x36   :  { %2880 = vsyncadd [#allocation5], 4294966272 }
  0x37   :  { %2881 = dma.done.wait [#allocation8], 12288  }
  0x38   :  { %2882 = vsyncadd [#allocation8], 4294955008 }
  0x39   :  { %2883 = dma.done.wait [#allocation11], 2048  }
  0x3a   :  { %2884 = vsyncadd [#allocation11], 4294965248  ;;  %v3957_v0 = vmov 0.0   ;;  %s93_s5 = sld [smem:[#allocation3]]  ;;  %vm2899_vm0 = vmmov 0   ;;  %v231_v1 = vld [vmem:[#allocation7 + $0x170] sm:$0xff] }
  0x3b   :  { %314 = vmatprep.mubr.f32.mxu0 %v3957_v0  ;;  %2254 = vmatprep.subr.mxu1 %v3957_v0  ;;  %s2009_s17 = sld [smem:[#allocation3 + $0x1]]  ;;  %v230_v2 = vld [vmem:[#allocation7 + $0x168] sm:$0xff]  ;;  %v228_v3 = vld [vmem:[#allocation7 + $0x158] sm:$0xff]  ;;  %v227_v4 = vld [vmem:[#allocation7 + $0x150] sm:$0xff]  ;;  %vm170_vm1 = vcmask 1040384   ;;  %vm172_vm2 = vcmask 1041408  }
  0x3c   :  { %s2980_s18 = sld [smem:[#allocation3 + $0x2]]  ;;  %2286 = vmatprep.mubr.msk.f32.mxu1 %vm2899_vm0, %v3957_v0  ;;  %250 = vmatprep.subr.mxu0 %v231_v1  ;;  %v225_v5 = vld [vmem:[#allocation7 + $0x140] sm:$0xff]  ;;  %v224_v6 = vld [vmem:[#allocation7 + $0x138] sm:$0xff]  ;;  %v222_v7 = vld [vmem:[#allocation7 + $0x128] sm:$0xff]  ;;  %vm174_vm3 = vcmask 1042432   ;;  %vm176_vm4 = vcmask 1043456  }
  0x3d   :  { %s2984_s7 = sld [smem:[#allocation3 + $0x3]]  ;;  %251 = vmatpush1.msra.mxu0 %v230_v2  ;;  %v221_v8 = vld [vmem:[#allocation7 + $0x120] sm:$0xff]  ;;  %v219_v9 = vld [vmem:[#allocation7 + $0x110] sm:$0xff]  ;;  %v218_v10 = vld [vmem:[#allocation7 + $0x108] sm:$0xff]  ;;  %vm178_vm5 = vcmask 1044480   ;;  %vm180_vm6 = vcmask 1045504  }
  0x3e   :  { %s2986_s19 = sld [smem:[#allocation3 + $0x4]]  ;;  %252 = vmatprep.subr.mxu0 %v228_v3  ;;  %v216_v11 = vld [vmem:[#allocation7 + $0xf8] sm:$0xff]  ;;  %v215_v12 = vld [vmem:[#allocation7 + $0xf0] sm:$0xff]  ;;  %v213_v13 = vld [vmem:[#allocation7 + $0xe0] sm:$0xff]  ;;  %vm182_vm7 = vcmask 1046528  }
  0x3f   :  { %s2988_s0 = sld [smem:[#allocation3 + $0x5]]  ;;  %253 = vmatpush1.msra.mxu0 %v227_v4  ;;  %v212_v14 = vld [vmem:[#allocation7 + $0xd8] sm:$0xff]  ;;  %v210_v16 = vld [vmem:[#allocation7 + $0xc8] sm:$0xff]  ;;  %v229_v17 = vld [vmem:[#allocation7 + $0x160] sm:$0xff] }
  0x40   :  { %p94_p6 = scmp.lt.s32.totalorder %s93_s5, 63  ;;  %p2004_p7 = scmp.gt.s32.totalorder %s93_s5, 0  ;;  %254 = vmatprep.subr.mxu0 %v225_v5  ;;  %v232_v15 = vld [vmem:[#allocation7 + $0x178] sm:$0xff]  ;;  %v209_v18 = vld [vmem:[#allocation7 + $0xc0] sm:$0xff]  ;;  %v207_v20 = vld [vmem:[#allocation7 + $0xb0] sm:$0xff] }
  0x41   :  { %p101_p8 = scmp.lt.s32.totalorder %s2009_s17, 63  ;;  %p2010_p9 = scmp.gt.s32.totalorder %s2009_s17, 0  ;;  %255 = vmatpush1.msra.mxu0 %v224_v6  ;;  %2255 = vmatpush3.msra.mxu1 %v232_v15  ;;  %v226_v21 = vld [vmem:[#allocation7 + $0x148] sm:$0xff]  ;;  %v223_v24 = vld [vmem:[#allocation7 + $0x130] sm:$0xff]  ;;  %v204_v25 = vld [vmem:[#allocation7 + $0x98] sm:$0xff] }
  0x42   :  { %s4048_s5 = smov (!%p94_p6, %s93_s5), 63  ;;  %p108_p10 = scmp.lt.s32.totalorder %s2980_s18, 63  ;;  %256 = vmatprep.subr.mxu0 %v222_v7  ;;  %2256 = vmatprep.subr.mxu1 %v3957_v0  ;;  %v206_v22 = vld [vmem:[#allocation7 + $0xa8] sm:$0xff]  ;;  %v203_v27 = vld [vmem:[#allocation7 + $0x90] sm:$0xff]  ;;  %v220_v29 = vld [vmem:[#allocation7 + $0x118] sm:$0xff] }
  0x43   :  { %s4050_s17 = smov (!%p101_p8, %s2009_s17), 63  ;;  %s4052_s5 = smov (!%p2004_p7, %s4048_s5), 0  ;;  %257 = vmatpush1.msra.mxu0 %v221_v8  ;;  %2257 = vmatpush3.msra.mxu1 %v229_v17  ;;  %v201_v30 = vld [vmem:[#allocation7 + $0x80] sm:$0xff]  ;;  %v200_v31 = vld [vmem:[#allocation7 + $0x78] sm:$0xff]  ;;  %v198_v35 = vld [vmem:[#allocation7 + $0x68] sm:$0xff] }
  0x44   :  { %s4054_s17 = smov (!%p2010_p9, %s4050_s17), 0  ;;  %p2016_p11 = scmp.gt.s32.totalorder %s2980_s18, 0  ;;  %258 = vmatprep.subr.mxu0 %v219_v9  ;;  %2258 = vmatprep.subr.mxu1 %v3957_v0  ;;  %v217_v34 = vld [vmem:[#allocation7 + $0x100] sm:$0xff]  ;;  %v214_v38 = vld [vmem:[#allocation7 + $0xe8] sm:$0xff]  ;;  %v195_v39 = vld [vmem:[#allocation7 + $0x50] sm:$0xff] }
  0x45   :  { %s4056_s18 = smov (!%p108_p10, %s2980_s18), 63  ;;  %p115_p12 = scmp.lt.s32.totalorder %s2984_s7, 63  ;;  %259 = vmatpush1.msra.mxu0 %v218_v10  ;;  %2259 = vmatpush3.msra.mxu1 %v226_v21  ;;  %v197_v37 = vld [vmem:[#allocation7 + $0x60] sm:$0xff]  ;;  %v194_v42 = vld [vmem:[#allocation7 + $0x48] sm:$0xff]  ;;  %v211_v44 = vld [vmem:[#allocation7 + $0xd0] sm:$0xff] }
  0x46   :  { %p2022_p13 = scmp.gt.s32.totalorder %s2984_s7, 0  ;;  %s4058_s18 = smov (!%p2016_p11, %s4056_s18), 0  ;;  %260 = vmatprep.subr.mxu0 %v216_v11  ;;  %2260 = vmatprep.subr.mxu1 %v3957_v0  ;;  %v192_v45 = vld [vmem:[#allocation7 + $0x38] sm:$0xff]  ;;  %v191_v46 = vld [vmem:[#allocation7 + $0x30] sm:$0xff]  ;;  %v189_v50 = vld [vmem:[#allocation7 + $0x20] sm:$0xff] }
  0x47   :  { %s116_s20 = scalar_select %p115_p12, %s2984_s7, 63  ;;  %261 = vmatpush1.msra.mxu0 %v215_v12  ;;  %2261 = vmatpush3.msra.mxu1 %v223_v24  ;;  %v208_v49 = vld [vmem:[#allocation7 + $0xb8] sm:$0xff]  ;;  %v205_v53 = vld [vmem:[#allocation7 + $0xa0] sm:$0xff]  ;;  %v186_v54 = vld [vmem:[#allocation7 + $0x8] sm:$0xff] }
  0x48   :  { %p122_p0 = scmp.lt.s32.totalorder %s2986_s19, 63  ;;  %262 = vmatprep.subr.mxu0 %v213_v13  ;;  %s105_s21 = scalar_lea.vmem [#allocation4], %s4054_s17  ;;  %2262 = vmatprep.subr.mxu1 %v3957_v0  ;;  %v188_v52 = vld [vmem:[#allocation7 + $0x18] sm:$0xff]  ;;  %v185_v56 = vld [vmem:[#allocation7] sm:$0xff]  ;;  %v202_v58 = vld [vmem:[#allocation7 + $0x88] sm:$0xff] }
  0x49   :  { %v106_v19 = vld [vmem:[%s105_s21] sm:$0x1]  ;;  %s4060_s20 = smov (!%p2022_p13, %s116_s20), 0  ;;  %263 = vmatpush1.msra.mxu0 %v212_v14  ;;  %s112_s23 = scalar_lea.vmem [#allocation4], %s4058_s18  ;;  %2263 = vmatpush3.msra.mxu1 %v220_v29  ;;  %v3045_v59 = vld [vmem:[#allocation9 + $0x170] sm:$0xff]  ;;  %v196_v1 = vld [vmem:[#allocation7 + $0x58] sm:$0xff] }
  0x4a   :  { %s123_s22 = scalar_select %p122_p0, %s2986_s19, 63  ;;  %264 = vmatprep.subr.mxu0 %v210_v16  ;;  %v113_v23 = vld [vmem:[%s112_s23] sm:$0x1]  ;;  %v150_v26 = vrot.slane %v106_v19, 7  ;;  %2264 = vmatprep.subr.mxu1 %v3957_v0  ;;  %3989 = vst [vmem:[#allocation21_spill] sm:$0xff] %v3045_v59  ;;  %v199_v60 = vld [vmem:[#allocation7 + $0x70] sm:$0xff] }
  0x4b   :  { %p2028_p1 = scmp.gt.s32.totalorder %s2986_s19, 0  ;;  %265 = vmatpush1.msra.mxu0 %v209_v18  ;;  %p129_p2 = scmp.lt.s32.totalorder %s2988_s0, 63  ;;  %v153_v32 = vrot.slane %v113_v23, 6  ;;  %2265 = vmatpush3.msra.mxu1 %v217_v34  ;;  %v193_v4 = vld [vmem:[#allocation7 + $0x40] sm:$0xff]  ;;  %v190_v6 = vld [vmem:[#allocation7 + $0x28] sm:$0xff]  ;;  %v187_v10 = vld [vmem:[#allocation7 + $0x10] sm:$0xff] }
  0x4c   :  { %p2034_p3 = scmp.gt.s32.totalorder %s2988_s0, 0  ;;  %266 = vmatprep.subr.mxu0 %v207_v20  ;;  %s98_s24 = scalar_lea.vmem [#allocation4], %s4052_s5  ;;  %2266 = vmatprep.subr.mxu1 %v3957_v0  ;;  %v3057_v9 = vld [vmem:[#allocation9 + $0x168] sm:$0xff]  ;;  %v3060_v11 = vld [vmem:[#allocation9 + $0x158] sm:$0xff]  ;;  %v3062_v12 = vld [vmem:[#allocation9 + $0x150] sm:$0xff] }
  0x4d   :  { %v99_v28 = vld [vmem:[%s98_s24] sm:$0x1]  ;;  %s4062_s22 = smov (!%p2028_p1, %s123_s22), 0  ;;  %267 = vmatpush1.msra.mxu0 %v206_v22  ;;  %s119_s26 = scalar_lea.vmem [#allocation4], %s4060_s20  ;;  %2267 = vmatpush3.msra.mxu1 %v214_v38  ;;  %v3069_v14 = vld [vmem:[#allocation9 + $0x138] sm:$0xff]  ;;  %v3075_v16 = vld [vmem:[#allocation9 + $0x128] sm:$0xff] }
  0x4e   :  { %s130_s25 = scalar_select %p129_p2, %s2988_s0, 63  ;;  %268 = vmatprep.subr.mxu0 %v204_v25  ;;  %v120_v33 = vld [vmem:[%s119_s26] sm:$0x1]  ;;  %v171_v36 = vsel %vm170_vm1, %v99_v28, %v150_v26  ;;  %2268 = vmatprep.subr.mxu1 %v3957_v0  ;;  %v3072_v15 = vld [vmem:[#allocation9 + $0x178] sm:$0xff]  ;;  %v3084_v19 = vld [vmem:[#allocation9 + $0x110] sm:$0xff] }
  0x4f   :  { %s3020_s27 = sld [smem:[#allocation3 + $0x6]]  ;;  %269 = vmatpush1.msra.mxu0 %v203_v27  ;;  %s126_s29 = scalar_lea.vmem [#allocation4], %s4062_s22  ;;  %v156_v41 = vrot.slane %v120_v33, 5  ;;  %v173_v43 = vsel %vm172_vm2, %v171_v36, %v153_v32  ;;  %2269 = vmatpush3.msra.mxu1 %v211_v44  ;;  %v3066_v13 = vld [vmem:[#allocation9 + $0x140] sm:$0xff]  ;;  %v3088_v20 = vld [vmem:[#allocation9 + $0x108] sm:$0xff]  ;;  %v3094_v22 = vld [vmem:[#allocation9 + $0xf8] sm:$0xff] }
  0x50   :  { %s4064_s25 = smov (!%p2034_p3, %s130_s25), 0  ;;  %270 = vmatprep.subr.mxu0 %v201_v30  ;;  %s3026_s28 = sld [smem:[#allocation3 + $0x7]]  ;;  %v127_v40 = vld [vmem:[%s126_s29] sm:$0x1]  ;;  %2270 = vmatprep.subr.mxu1 %v3957_v0  ;;  %v3091_v21 = vld [vmem:[#allocation9 + $0x148] sm:$0xff]  ;;  %v3098_v23 = vld [vmem:[#allocation9 + $0xf0] sm:$0xff] }
  0x51   :  { %271 = vmatpush1.msra.mxu0 %v200_v31  ;;  %s133_s30 = scalar_lea.vmem [#allocation4], %s4064_s25  ;;  %v159_v48 = vrot.slane %v127_v40, 4  ;;  %v175_v51 = vsel %vm174_vm3, %v173_v43, %v156_v41  ;;  %2271 = vmatpush3.msra.mxu1 %v208_v49  ;;  %v3079_v17 = vld [vmem:[#allocation9 + $0x120] sm:$0xff]  ;;  %v3101_v24 = vld [vmem:[#allocation9 + $0x130] sm:$0xff]  ;;  %v3108_v26 = vld [vmem:[#allocation9 + $0xd8] sm:$0xff]  ;;  %s2900_s17 = smov [#allocation13]  }
  0x52   :  { %272 = vmatprep.subr.mxu0 %v198_v35  ;;  %v134_v47 = vld [vmem:[%s133_s30] sm:$0x1]  ;;  %2272 = vmatprep.subr.mxu1 %v3957_v0  ;;  %v3111_v27 = vld [vmem:[#allocation9 + $0x118] sm:$0xff]  ;;  %v3114_v28 = vld [vmem:[#allocation9 + $0xc8] sm:$0xff]  ;;  %s1981_s18 = sshll.u32 %s2900_s17, 4  ;;  %s1982_s18 = int_to_ptr.vmem [resolvable:$true] %s1981_s18 }
  0x53   :  { %273 = vmatpush1.msra.mxu0 %v197_v37  ;;  %v162_v55 = vrot.slane %v134_v47, 3  ;;  %v177_v57 = vsel %vm176_vm4, %v175_v51, %v159_v48  ;;  %2273 = vmatpush3.msra.mxu1 %v205_v53  ;;  %v3081_v18 = vld [vmem:[#allocation9 + $0x160] sm:$0xff]  ;;  %v3124_v31 = vld [vmem:[#allocation9 + $0xb0] sm:$0xff]  ;;  %v3128_v32 = vld [vmem:[#allocation9 + $0xa8] sm:$0xff]  ;;  %s2837_s7 = scalar_lea.vmem %s1982_s18, 16  ;;  %s2841_s19 = scalar_lea.vmem %s1982_s18, 32 }
  0x54   :  { %274 = vmatprep.subr.mxu0 %v195_v39  ;;  %2274 = vmatprep.subr.mxu1 %v3957_v0  ;;  %v3104_v25 = vld [vmem:[#allocation9 + $0xe0] sm:$0xff]  ;;  %v3131_v33 = vld [vmem:[#allocation9 + $0xe8] sm:$0xff]  ;;  %v3134_v34 = vld [vmem:[#allocation9 + $0x98] sm:$0xff]  ;;  %p2838_p8 = scmp.ne.s32.totalorder %s1982_s18, %s2837_s7  ;;  %p2842_p9 = scmp.lt.s32.totalorder %s1982_s18, %s1982_s18 }
  0x55   :  { %p136_p4 = scmp.lt.s32.totalorder %s3020_s27, 63  ;;  %p2040_p5 = scmp.gt.s32.totalorder %s3020_s27, 0  ;;  %275 = vmatpush1.msra.mxu0 %v194_v42  ;;  %v179_v62 = vsel %vm178_vm5, %v177_v57, %v162_v55  ;;  %2275 = vmatpush3.msra.mxu1 %v202_v58  ;;  %v3118_v29 = vld [vmem:[#allocation9 + $0xc0] sm:$0xff]  ;;  %v3138_v35 = vld [vmem:[#allocation9 + $0x90] sm:$0xff]  ;;  %v3148_v38 = vld [vmem:[#allocation9 + $0x78] sm:$0xff] }
  0x56   :  { %276 = vmatprep.subr.mxu0 %v192_v45  ;;  %p143_p6 = scmp.lt.s32.totalorder %s3026_s28, 63  ;;  %p2046_p7 = scmp.gt.s32.totalorder %s3026_s28, 0  ;;  %2276 = vmatprep.subr.mxu1 %v3957_v0  ;;  %v3121_v30 = vld [vmem:[#allocation9 + $0x100] sm:$0xff]  ;;  %v3141_v36 = vld [vmem:[#allocation9 + $0xd0] sm:$0xff]  ;;  %v3151_v39 = vld [vmem:[#allocation9 + $0xb8] sm:$0xff] }
  0x57   :  { %s137_s11 = scalar_select %p136_p4, %s3020_s27, 63  ;;  %277 = vmatpush1.msra.mxu0 %v191_v46  ;;  %2277 = vmatpush3.msra.mxu1 %v199_v60  ;;  %v3144_v37 = vld [vmem:[#allocation9 + $0x80] sm:$0xff]  ;;  %v3154_v40 = vld [vmem:[#allocation9 + $0x68] sm:$0xff]  ;;  %v3164_v43 = vld [vmem:[#allocation9 + $0x50] sm:$0xff] }
  0x58   :  { %278 = vmatprep.subr.mxu0 %v189_v50  ;;  %s144_s3 = scalar_select %p143_p6, %s3026_s28, 63  ;;  %2278 = vmatprep.subr.mxu1 %v3957_v0  ;;  %v3158_v41 = vld [vmem:[#allocation9 + $0x60] sm:$0xff]  ;;  %v3168_v44 = vld [vmem:[#allocation9 + $0x48] sm:$0xff]  ;;  %v3174_v46 = vld [vmem:[#allocation9 + $0x38] sm:$0xff] }
  0x59   :  { %s4066_s11 = smov (!%p2040_p5, %s137_s11), 0  ;;  %279 = vmatpush1.msra.mxu0 %v188_v52  ;;  %2279 = vmatpush3.msra.mxu1 %v196_v1  ;;  %v3161_v42 = vld [vmem:[#allocation9 + $0xa0] sm:$0xff]  ;;  %v3171_v45 = vld [vmem:[#allocation9 + $0x88] sm:$0xff]  ;;  %v3178_v47 = vld [vmem:[#allocation9 + $0x30] sm:$0xff]  ;;  %p2843_p10 = scmp.lt.s32.totalorder %s2841_s19, %s2837_s7 }
  0x5a   :  { %280 = vmatprep.subr.mxu0 %v186_v54  ;;  %s140_s12 = scalar_lea.vmem [#allocation4], %s4066_s11  ;;  %s4068_s3 = smov (!%p2046_p7, %s144_s3), 0  ;;  %2280 = vmatprep.subr.mxu1 %v3957_v0  ;;  %3990 = vst [vmem:[#allocation22_spill] sm:$0xff] %v3178_v47  ;;  %v3181_v48 = vld [vmem:[#allocation9 + $0x70] sm:$0xff]  ;;  %v3184_v49 = vld [vmem:[#allocation9 + $0x20] sm:$0xff]  ;;  %v3188_v50 = vld [vmem:[#allocation9 + $0x18] sm:$0xff] }
  0x5b   :  { %281 = vmatpush1.msra.mxu0 %v185_v56  ;;  %v141_v61 = vld [vmem:[%s140_s12] sm:$0x1]  ;;  %s147_s13 = scalar_lea.vmem [#allocation4], %s4068_s3  ;;  %2281 = vmatpush3.msra.mxu1 %v193_v4  ;;  %3991 = vst [vmem:[#allocation23_spill] sm:$0xff] %v3184_v49  ;;  %3992 = vst [vmem:[#allocation24_spill] sm:$0xff] %v3188_v50  ;;  %v3191_v51 = vld [vmem:[#allocation9 + $0x58] sm:$0xff]  ;;  %p2844_p11 = por %p2843_p10, %p2842_p9 }
  0x5c   :  { %v165_v63 = vrot.slane %v141_v61, 2  ;;  %457 = vmatprep.subr.mxu0 %v3045_v59  ;;  %v148_v2 = vld [vmem:[%s147_s13] sm:$0x1]  ;;  %2282 = vmatprep.subr.mxu1 %v3957_v0  ;;  %v3194_v52 = vld [vmem:[#allocation9 + $0x8] sm:$0xff]  ;;  %v3218_v57 = vld [vmem:[#allocation9 + $0x10] sm:$0xff]  ;;  %v3956_v61 = vlaneseq }
  0x5d   :  { %v168_v5 = vrot.slane %v148_v2, 1  ;;  %2283 = vmatpush3.msra.mxu1 %v190_v6  ;;  %3993 = vst [vmem:[#allocation25_spill] sm:$0xff] %v3194_v52  ;;  %v3198_v53 = vld [vmem:[#allocation9] sm:$0xff]  ;;  %v3212_v56 = vld [vmem:[#allocation9 + $0x28] sm:$0xff]  ;;  %3997 = vst [vmem:[#allocation29_spill] sm:$0xff] %v3218_v57  ;;  %p2845_p12 = pnand %p2844_p11, %p2838_p8 }
  0x5e   :  { %v181_v3 = vsel %vm180_vm6, %v179_v62, %v165_v63  ;;  %2284 = vmatprep.subr.mxu1 %v3957_v0  ;;  %3994 = vst [vmem:[#allocation26_spill] sm:$0xff] %v3198_v53  ;;  %v3201_v54 = vld [vmem:[#allocation9 + $0x40] sm:$0xff]  ;;  %3996 = vst [vmem:[#allocation28_spill] sm:$0xff] %v3212_v56  ;;  %v236_v62 = vshrl.u32 %v3956_v61, 7 }
  0x5f   :  { %v183_v7 = vsel %vm182_vm7, %v181_v3, %v168_v5  ;;  %2285 = vmatpush3.msra.mxu1 %v187_v10  ;;  %3995 = vst [vmem:[#allocation27_spill] sm:$0xff] %v3201_v54  ;;  %v3207_v55 = vld [vmem:[%s3947_s2] sm:$0x1] }
  0x60   :  { %v184_v8 = vmax.f32 %v183_v7, 0.0  ;;  %2289 = vmatprep.subr.mxu1 %v3957_v0  ;;  %v237_v63 = vsub.s32 0, %v236_v62  ;;  %v233_v1 = vld [vmem:[%s3949_s4] sm:$0x7]  ;;  %v241_v7 = vsub.s32 1, %v236_v62 }
  0x61   :  { %v440_v3 = vld [vmem:[%s3951_s6] sm:$0x7] }
  0x62   :  { %315 = vmatmul.mubr.f32.vlgmr.msra.gmra.mxu0 %v184_v8  ;;  %2287 = vmatmul.mubr.f32.vlgmr.msra.gmra.mxu1 %v184_v8  ;;  %v238_v4 = vrot.slane %v233_v1, %v237_v63  ;;  %v3302_v5 = vrot.slane %v440_v3, %v237_v63 }
  0x63   :  { %458 = vmatpush1.msra.mxu0 %v3057_v9  ;;  %521 = vmatprep.mubr.f32.mxu0 %v3957_v0 }
  0x64   :  { %459 = vmatprep.subr.mxu0 %v3060_v11  ;;  %2290 = vmatpush3.msra.mxu1 %v3072_v15  ;;  %3998 = vst [vmem:[#allocation30_spill] sm:$0xff] %v3302_v5 }
  0x65   :  { %460 = vmatpush1.msra.mxu0 %v3062_v12  ;;  %2291 = vmatprep.subr.mxu1 %v3957_v0 }
  0x66   :  { %461 = vmatprep.subr.mxu0 %v3066_v13  ;;  %2292 = vmatpush3.msra.mxu1 %v3081_v18 }
  0x67   :  { %462 = vmatpush1.msra.mxu0 %v3069_v14  ;;  %2293 = vmatprep.subr.mxu1 %v3957_v0 }
  0x68   :  { %463 = vmatprep.subr.mxu0 %v3075_v16  ;;  %2294 = vmatpush3.msra.mxu1 %v3091_v21 }
  0x69   :  { %464 = vmatpush1.msra.mxu0 %v3079_v17  ;;  %2295 = vmatprep.subr.mxu1 %v3957_v0 }
  0x6a   :  { %465 = vmatprep.subr.mxu0 %v3084_v19  ;;  %2296 = vmatpush3.msra.mxu1 %v3101_v24 }
  0x6b   :  { %466 = vmatpush1.msra.mxu0 %v3088_v20  ;;  %2297 = vmatprep.subr.mxu1 %v3957_v0 }
  0x6c   :  { %467 = vmatprep.subr.mxu0 %v3094_v22  ;;  %2298 = vmatpush3.msra.mxu1 %v3111_v27 }
  0x6d   :  { %468 = vmatpush1.msra.mxu0 %v3098_v23  ;;  %2299 = vmatprep.subr.mxu1 %v3957_v0 }
  0x6e   :  { %469 = vmatprep.subr.mxu0 %v3104_v25  ;;  %2300 = vmatpush3.msra.mxu1 %v3121_v30 }
  0x6f   :  { %470 = vmatpush1.msra.mxu0 %v3108_v26  ;;  %2301 = vmatprep.subr.mxu1 %v3957_v0 }
  0x70   :  { %471 = vmatprep.subr.mxu0 %v3114_v28  ;;  %2302 = vmatpush3.msra.mxu1 %v3131_v33 }
  0x71   :  { %472 = vmatpush1.msra.mxu0 %v3118_v29  ;;  %2303 = vmatprep.subr.mxu1 %v3957_v0 }
  0x72   :  { %473 = vmatprep.subr.mxu0 %v3124_v31  ;;  %2304 = vmatpush3.msra.mxu1 %v3141_v36 }
  0x73   :  { %474 = vmatpush1.msra.mxu0 %v3128_v32  ;;  %2305 = vmatprep.subr.mxu1 %v3957_v0 }
  0x74   :  { %475 = vmatprep.subr.mxu0 %v3134_v34  ;;  %2306 = vmatpush3.msra.mxu1 %v3151_v39 }
  0x75   :  { %476 = vmatpush1.msra.mxu0 %v3138_v35  ;;  %2307 = vmatprep.subr.mxu1 %v3957_v0 }
  0x76   :  { %477 = vmatprep.subr.mxu0 %v3144_v37  ;;  %2308 = vmatpush3.msra.mxu1 %v3161_v42 }
  0x77   :  { %478 = vmatpush1.msra.mxu0 %v3148_v38  ;;  %2309 = vmatprep.subr.mxu1 %v3957_v0 }
  0x78   :  { %479 = vmatprep.subr.mxu0 %v3154_v40  ;;  %2310 = vmatpush3.msra.mxu1 %v3171_v45 }
  0x79   :  { %480 = vmatpush1.msra.mxu0 %v3158_v41  ;;  %2311 = vmatprep.subr.mxu1 %v3957_v0 }
  0x7a   :  { %481 = vmatprep.subr.mxu0 %v3164_v43  ;;  %2312 = vmatpush3.msra.mxu1 %v3181_v48 }
  0x7b   :  { %482 = vmatpush1.msra.mxu0 %v3168_v44  ;;  %2313 = vmatprep.subr.mxu1 %v3957_v0 }
  0x7c   :  { %483 = vmatprep.subr.mxu0 %v3174_v46  ;;  %2314 = vmatpush3.msra.mxu1 %v3191_v51 }
  0x7d   :  { %484 = vmatpush1.msra.mxu0 %v3178_v47  ;;  %2315 = vmatprep.subr.mxu1 %v3957_v0 }
  0x7e   :  { %485 = vmatprep.subr.mxu0 %v3184_v49  ;;  %2316 = vmatpush3.msra.mxu1 %v3201_v54 }
  0x7f   :  { %486 = vmatpush1.msra.mxu0 %v3188_v50  ;;  %2317 = vmatprep.subr.mxu1 %v3957_v0 }
  0x80   :  { %487 = vmatprep.subr.mxu0 %v3194_v52  ;;  %2318 = vmatpush3.msra.mxu1 %v3212_v56 }
  0x81   :  { %488 = vmatpush1.msra.mxu0 %v3198_v53  ;;  %2321 = vmatprep.mubr.msk.f32.mxu1 %vm2899_vm0, %v3957_v0 }
  0x82   :  { %522 = vmatmul.mubr.f32.vlgmr.msra.gmra.mxu0 %v3207_v55  ;;  %2319 = vmatprep.subr.mxu1 %v3957_v0 }
  0x83   :  { %619 = vmatprep.subr.mxu0 %v3045_v59  ;;  %2320 = vmatpush3.msra.mxu1 %v3218_v57 }
  0x84   :  { %620 = vmatpush1.msra.mxu0 %v3057_v9  ;;  %2322 = vmatmul.mubr.f32.vlgmr.msra.gmra.mxu1 %v3207_v55 }
  0x85   :  { %2324 = vmatprep.subr.mxu1 %v3957_v0  ;;  %621 = vmatprep.subr.mxu0 %v3060_v11 }
  0x86   :  { %2325 = vmatpush3.msra.mxu1 %v3072_v15  ;;  %622 = vmatpush1.msra.mxu0 %v3062_v12 }
  0x87   :  { %2326 = vmatprep.subr.mxu1 %v3957_v0  ;;  %623 = vmatprep.subr.mxu0 %v3066_v13 }
  0x88   :  { %2327 = vmatpush3.msra.mxu1 %v3081_v18  ;;  %624 = vmatpush1.msra.mxu0 %v3069_v14 }
  0x89   :  { %2328 = vmatprep.subr.mxu1 %v3957_v0  ;;  %625 = vmatprep.subr.mxu0 %v3075_v16 }
  0x8a   :  { %2329 = vmatpush3.msra.mxu1 %v3091_v21  ;;  %626 = vmatpush1.msra.mxu0 %v3079_v17 }
  0x8b   :  { %2330 = vmatprep.subr.mxu1 %v3957_v0  ;;  %627 = vmatprep.subr.mxu0 %v3084_v19 }
  0x8c   :  { %2331 = vmatpush3.msra.mxu1 %v3101_v24  ;;  %628 = vmatpush1.msra.mxu0 %v3088_v20 }
  0x8d   :  { %2332 = vmatprep.subr.mxu1 %v3957_v0  ;;  %629 = vmatprep.subr.mxu0 %v3094_v22 }
  0x8e   :  { %2333 = vmatpush3.msra.mxu1 %v3111_v27  ;;  %630 = vmatpush1.msra.mxu0 %v3098_v23 }
  0x8f   :  { %2334 = vmatprep.subr.mxu1 %v3957_v0  ;;  %631 = vmatprep.subr.mxu0 %v3104_v25 }
  0x90   :  { %2335 = vmatpush3.msra.mxu1 %v3121_v30  ;;  %632 = vmatpush1.msra.mxu0 %v3108_v26 }
  0x91   :  { %2336 = vmatprep.subr.mxu1 %v3957_v0  ;;  %633 = vmatprep.subr.mxu0 %v3114_v28 }
  0x92   :  { %2337 = vmatpush3.msra.mxu1 %v3131_v33  ;;  %634 = vmatpush1.msra.mxu0 %v3118_v29 }
  0x93   :  { %2338 = vmatprep.subr.mxu1 %v3957_v0  ;;  %635 = vmatprep.subr.mxu0 %v3124_v31 }
  0x94   :  { %2339 = vmatpush3.msra.mxu1 %v3141_v36  ;;  %636 = vmatpush1.msra.mxu0 %v3128_v32 }
  0x95   :  { %2340 = vmatprep.subr.mxu1 %v3957_v0  ;;  %637 = vmatprep.subr.mxu0 %v3134_v34 }
  0x96   :  { %2341 = vmatpush3.msra.mxu1 %v3151_v39  ;;  %638 = vmatpush1.msra.mxu0 %v3138_v35 }
  0x97   :  { %2342 = vmatprep.subr.mxu1 %v3957_v0  ;;  %639 = vmatprep.subr.mxu0 %v3144_v37 }
  0x98   :  { %2343 = vmatpush3.msra.mxu1 %v3161_v42  ;;  %640 = vmatpush1.msra.mxu0 %v3148_v38 }
  0x99   :  { %2344 = vmatprep.subr.mxu1 %v3957_v0  ;;  %641 = vmatprep.subr.mxu0 %v3154_v40 }
  0x9a   :  { %2345 = vmatpush3.msra.mxu1 %v3171_v45  ;;  %642 = vmatpush1.msra.mxu0 %v3158_v41 }
  0x9b   :  { %2346 = vmatprep.subr.mxu1 %v3957_v0  ;;  %643 = vmatprep.subr.mxu0 %v3164_v43 }
  0x9c   :  { %2347 = vmatpush3.msra.mxu1 %v3181_v48  ;;  %644 = vmatpush1.msra.mxu0 %v3168_v44 }
  0x9d   :  { %2348 = vmatprep.subr.mxu1 %v3957_v0  ;;  %645 = vmatprep.subr.mxu0 %v3174_v46 }
  0x9e   :  { %2349 = vmatpush3.msra.mxu1 %v3191_v51  ;;  %646 = vmatpush1.msra.mxu0 %v3178_v47 }
  0x9f   :  { %2350 = vmatprep.subr.mxu1 %v3957_v0  ;;  %647 = vmatprep.subr.mxu0 %v3184_v49 }
  0xa0   :  { %2351 = vmatpush3.msra.mxu1 %v3201_v54  ;;  %648 = vmatpush1.msra.mxu0 %v3188_v50 }
  0xa1   :  { %2352 = vmatprep.subr.mxu1 %v3957_v0  ;;  %649 = vmatprep.subr.mxu0 %v3194_v52 }
  0xa2   :  { %2353 = vmatpush3.msra.mxu1 %v3212_v56  ;;  %650 = vmatpush1.msra.mxu0 %v3198_v53 }
  0xa3   :  { %2354 = vmatprep.subr.mxu1 %v3957_v0  ;;  %683 = vmatprep.mubr.f32.mxu0 %v3957_v0 }
  0xa4   :  { %2355 = vmatpush3.msra.mxu1 %v3218_v57  ;;  %2356 = vmatprep.mubr.msk.f32.mxu1 %vm2899_vm0, %v3957_v0 }
  0xa5   :  { %796 = vmatprep.subr.mxu0 %v3045_v59  ;;  %2359 = vmatprep.subr.mxu1 %v3957_v0  ;;  %v242_v59 = vrot.slane %v233_v1, %v241_v7 }
 0x122   :  { %v387_v58 = vpop.f32.mrf.mxu1  ;;  %v316_v2 = vpop.f32.mrf.mxu0 }
 0x123   :  { %v3304_v10 = vadd.f32 %v316_v2, %v238_v4 }
 0x124   :  { %v2288_v60 = vpop.f32.mrf.mxu1  ;;  %v318_v6 = vpop.f32.mrf.mxu0 }
 0x125   :  { %3999 = vst [vmem:[#allocation31_spill] sm:$0xff] %v3304_v10  ;;  %v3306_v60 = vrot.slane %v440_v3, %v241_v7  ;;  %v3311_v63 = vadd.f32 %v318_v6, %v242_v59 }
 0x142   :  { %v523_v8 = vpop.f32.mrf.mxu0 }
 0x143   :  { %v524_v61 = vadd.f32 %v523_v8, %v3302_v5  ;;  %v245_v8 = vsub.s32 2, %v236_v62 }
 0x144   :  { %v525_v0 = vpop.f32.mrf.mxu0  ;;  %v594_v53 = vpop.f32.mrf.mxu1 }
 0x145   :  { %v598_v57 = vadd.f32 %v524_v61, %v3304_v10  ;;  %v526_v56 = vadd.f32 %v525_v0, %v3306_v60  ;;  %v3314_v5 = vrot.slane %v440_v3, %v245_v8  ;;  %v246_v61 = vrot.slane %v233_v1, %v245_v8  ;;  %v4003_v1 = vld [vmem:[#allocation24_spill] sm:$0xff]  ;;  %v4007_v8 = vld [vmem:[#allocation29_spill] sm:$0xff] }
 0x146   :  { %v2323_v50 = vpop.f32.mrf.mxu1 }
 0x147   :  { %v2051_v52 = vmul.f32 -1.442695, %v598_v57  ;;  %v605_v49 = vadd.f32 %v526_v56, %v3311_v63  ;;  %v595_v57 = vadd.f32 %v594_v53, %v3314_v5  ;;  %v3317_v50 = vadd.f32 %v387_v58, %v246_v61  ;;  %v4002_v58 = vld [vmem:[#allocation23_spill] sm:$0xff] }
 0x148   :  { %v4000_v53 = vmov 0.0  }
 0x149   :  { %2617 = vpow2.f32 %v2051_v52  ;;  %v2052_v2 = vmul.f32 -1.442695, %v605_v49 }
 0x14b   :  { %2619 = vpow2.f32 %v2052_v2  ;;  %v4005_v2 = vld [vmem:[#allocation25_spill] sm:$0xff] }
 0x156   :  { %v2618_v4 = vpop.eup %2617 }
 0x157   :  { %v602_v54 = vadd.f32 1.0, %v2618_v4  ;;  %v4006_v4 = vld [vmem:[#allocation26_spill] sm:$0xff] }
 0x158   :  { %v2620_v7 = vpop.eup %2619 }
 0x159   :  { %2621 = vrcp.f32 %v602_v54  ;;  %v609_v10 = vadd.f32 1.0, %v2620_v7  ;;  %v4008_v7 = vld [vmem:[#allocation21_spill] sm:$0xff] }
 0x15b   :  { %2623 = vrcp.f32 %v609_v10  ;;  %v4004_v10 = vld [vmem:[#allocation28_spill] sm:$0xff] }
 0x166   :  { %v2622_v0 = vpop.eup %2621 }
 0x167   :  { %v612_v59 = vmul.f32 %v2622_v0, %v595_v57  ;;  %v4009_v0 = vld [vmem:[#allocation30_spill] sm:$0xff] }
 0x168   :  { %v2624_v49 = vpop.eup %2623 }
 0x169   :  { %v613_v52 = vadd.f32 %v612_v59, %v3317_v50  ;;  %v615_v56 = vsub.f32 1.0, %v2624_v49  ;;  %v617_v62 = vmul.f32 %v2624_v49, %v3207_v55  ;;  %v4001_v55 = vld [vmem:[#allocation27_spill] sm:$0xff] }
 0x16b   :  { %2625 = vtanh.f32 %v613_v52 }
 0x178   :  { %v2626_v6 = vpop.eup %2625 }
 0x179   :  { %v616_v54 = vmul.f32 %v2626_v6, %v615_v56 }
 0x17b   :  { %v3321_v3 = vadd.f32 %v617_v62, %v616_v54  ;;  %v4010_v54 = vld [vmem:[#allocation31_spill] sm:$0xff] }
 0x17d   :  { %684 = vmatmul.mubr.f32.vlgmr.msra.gmra.mxu0 %v3321_v3  ;;  %2357 = vmatmul.mubr.f32.vlgmr.msra.gmra.mxu1 %v3321_v3 }
 0x17e   :  { %797 = vmatpush1.msra.mxu0 %v3057_v9  ;;  %2360 = vmatpush3.msra.mxu1 %v3072_v15 }
 0x17f   :  { %798 = vmatprep.subr.mxu0 %v3060_v11  ;;  %2361 = vmatprep.subr.mxu1 %v4000_v53 }
 0x180   :  { %799 = vmatpush1.msra.mxu0 %v3062_v12  ;;  %2362 = vmatpush3.msra.mxu1 %v3081_v18 }
 0x181   :  { %800 = vmatprep.subr.mxu0 %v3066_v13  ;;  %2363 = vmatprep.subr.mxu1 %v4000_v53 }
 0x182   :  { %801 = vmatpush1.msra.mxu0 %v3069_v14  ;;  %2364 = vmatpush3.msra.mxu1 %v3091_v21 }
 0x183   :  { %802 = vmatprep.subr.mxu0 %v3075_v16  ;;  %2365 = vmatprep.subr.mxu1 %v4000_v53 }
 0x184   :  { %803 = vmatpush1.msra.mxu0 %v3079_v17  ;;  %2366 = vmatpush3.msra.mxu1 %v3101_v24 }
 0x185   :  { %804 = vmatprep.subr.mxu0 %v3084_v19  ;;  %2367 = vmatprep.subr.mxu1 %v4000_v53 }
 0x186   :  { %805 = vmatpush1.msra.mxu0 %v3088_v20  ;;  %2368 = vmatpush3.msra.mxu1 %v3111_v27 }
 0x187   :  { %806 = vmatprep.subr.mxu0 %v3094_v22  ;;  %2369 = vmatprep.subr.mxu1 %v4000_v53 }
 0x188   :  { %807 = vmatpush1.msra.mxu0 %v3098_v23  ;;  %2370 = vmatpush3.msra.mxu1 %v3121_v30 }
 0x189   :  { %808 = vmatprep.subr.mxu0 %v3104_v25  ;;  %2371 = vmatprep.subr.mxu1 %v4000_v53 }
 0x18a   :  { %809 = vmatpush1.msra.mxu0 %v3108_v26  ;;  %2372 = vmatpush3.msra.mxu1 %v3131_v33 }
 0x18b   :  { %810 = vmatprep.subr.mxu0 %v3114_v28  ;;  %2373 = vmatprep.subr.mxu1 %v4000_v53 }
 0x18c   :  { %811 = vmatpush1.msra.mxu0 %v3118_v29  ;;  %2374 = vmatpush3.msra.mxu1 %v3141_v36 }
 0x18d   :  { %812 = vmatprep.subr.mxu0 %v3124_v31  ;;  %2375 = vmatprep.subr.mxu1 %v4000_v53 }
 0x18e   :  { %813 = vmatpush1.msra.mxu0 %v3128_v32  ;;  %2376 = vmatpush3.msra.mxu1 %v3151_v39 }
 0x18f   :  { %814 = vmatprep.subr.mxu0 %v3134_v34  ;;  %2377 = vmatprep.subr.mxu1 %v4000_v53 }
 0x190   :  { %815 = vmatpush1.msra.mxu0 %v3138_v35  ;;  %2378 = vmatpush3.msra.mxu1 %v3161_v42 }
 0x191   :  { %816 = vmatprep.subr.mxu0 %v3144_v37  ;;  %2379 = vmatprep.subr.mxu1 %v4000_v53 }
 0x192   :  { %817 = vmatpush1.msra.mxu0 %v3148_v38  ;;  %2380 = vmatpush3.msra.mxu1 %v3171_v45 }
 0x193   :  { %818 = vmatprep.subr.mxu0 %v3154_v40  ;;  %2381 = vmatprep.subr.mxu1 %v4000_v53 }
 0x194   :  { %819 = vmatpush1.msra.mxu0 %v3158_v41  ;;  %2382 = vmatpush3.msra.mxu1 %v3181_v48 }
 0x195   :  { %820 = vmatprep.subr.mxu0 %v3164_v43  ;;  %2383 = vmatprep.subr.mxu1 %v4000_v53 }
 0x196   :  { %821 = vmatpush1.msra.mxu0 %v3168_v44  ;;  %2384 = vmatpush3.msra.mxu1 %v3191_v51 }
 0x197   :  { %822 = vmatprep.subr.mxu0 %v3174_v46  ;;  %2385 = vmatprep.subr.mxu1 %v4000_v53 }
 0x198   :  { %823 = vmatpush1.msra.mxu0 %v3178_v47  ;;  %2386 = vmatpush3.msra.mxu1 %v4001_v55 }
 0x199   :  { %824 = vmatprep.subr.mxu0 %v4002_v58  ;;  %2387 = vmatprep.subr.mxu1 %v4000_v53 }
 0x19a   :  { %825 = vmatpush1.msra.mxu0 %v4003_v1  ;;  %2388 = vmatpush3.msra.mxu1 %v4004_v10 }
 0x19b   :  { %826 = vmatprep.subr.mxu0 %v4005_v2  ;;  %2389 = vmatprep.subr.mxu1 %v4000_v53 }
 0x19c   :  { %827 = vmatpush1.msra.mxu0 %v4006_v4  ;;  %860 = vmatprep.mubr.f32.mxu0 %v4000_v53 }
 0x19d   :  { %2390 = vmatpush3.msra.mxu1 %v4007_v8  ;;  %2391 = vmatprep.mubr.msk.f32.mxu1 %vm2899_vm0, %v4000_v53 }
 0x19e   :  { %972 = vmatprep.subr.mxu0 %v4008_v7  ;;  %2394 = vmatprep.subr.mxu1 %v4000_v53 }
 0x23d   :  { %v685_v61 = vpop.f32.mrf.mxu0  ;;  %v756_v57 = vpop.f32.mrf.mxu1 }
 0x23e   :  { %v686_v59 = vadd.f32 %v685_v61, %v4009_v0  ;;  %v757_v61 = vadd.f32 %v756_v57, %v3314_v5  ;;  %v4013_v57 = vld [vmem:[#allocation24_spill] sm:$0xff] }
 0x23f   :  { %v687_v52 = vpop.f32.mrf.mxu0  ;;  %v2358_v49 = vpop.f32.mrf.mxu1 }
 0x240   :  { %v761_v56 = vrot.slane %v686_v59, 7  ;;  %v688_v6 = vadd.f32 %v687_v52, %v3306_v60  ;;  %v781_v49 = vrot.slane %v757_v61, 7  ;;  %v4016_v61 = vld [vmem:[#allocation26_spill] sm:$0xff] }
 0x242   :  { %v763_v62 = vadd.f32 %v761_v56, %v4010_v54  ;;  %v771_v8 = vrot.slane %v688_v6, 7 }
 0x244   :  { %v2053_v4 = vmul.f32 -1.442695, %v763_v62  ;;  %v773_v2 = vadd.f32 %v771_v8, %v3311_v63  ;;  %v4015_v62 = vld [vmem:[#allocation25_spill] sm:$0xff] }
 0x246   :  { %2627 = vpow2.f32 %v2053_v4  ;;  %v2054_v10 = vmul.f32 -1.442695, %v773_v2  ;;  %v789_v4 = vrot.slane %v3321_v3, 7 }
 0x248   :  { %2629 = vpow2.f32 %v2054_v10 }
 0x253   :  { %v2628_v7 = vpop.eup %2627 }
 0x254   :  { %v767_v1 = vadd.f32 1.0, %v2628_v7 }
 0x255   :  { %v2630_v58 = vpop.eup %2629 }
 0x256   :  { %2631 = vrcp.f32 %v767_v1  ;;  %v777_v0 = vadd.f32 1.0, %v2630_v58  ;;  %v4012_v58 = vld [vmem:[#allocation23_spill] sm:$0xff] }
 0x258   :  { %2633 = vrcp.f32 %v777_v0  ;;  %v4014_v0 = vld [vmem:[#allocation28_spill] sm:$0xff] }
 0x263   :  { %v2632_v59 = vpop.eup %2631 }
 0x264   :  { %v783_v55 = vmul.f32 %v2632_v59, %v781_v49  ;;  %v4017_v49 = vld [vmem:[#allocation29_spill] sm:$0xff] }
 0x265   :  { %v2634_v56 = vpop.eup %2633  ;;  %v4018_v59 = vld [vmem:[#allocation21_spill] sm:$0xff] }
 0x266   :  { %v784_v52 = vadd.f32 %v783_v55, %v3317_v50  ;;  %v786_v8 = vsub.f32 1.0, %v2634_v56  ;;  %v791_v6 = vmul.f32 %v2634_v56, %v789_v4  ;;  %v4011_v55 = vld [vmem:[#allocation27_spill] sm:$0xff]  ;;  %v4019_v4 = vld [vmem:[#allocation30_spill] sm:$0xff] }
 0x268   :  { %2635 = vtanh.f32 %v784_v52 }
 0x275   :  { %v2636_v2 = vpop.eup %2635 }
 0x276   :  { %v787_v10 = vmul.f32 %v2636_v2, %v786_v8 }
 0x278   :  { %v3399_v7 = vadd.f32 %v791_v6, %v787_v10 }
 0x27a   :  { %v794_v1 = vrot.slane %v3399_v7, 1 }
 0x27c   :  { %861 = vmatmul.mubr.f32.vlgmr.msra.gmra.mxu0 %v794_v1  ;;  %2392 = vmatmul.mubr.f32.vlgmr.msra.gmra.mxu1 %v794_v1 }
 0x27d   :  { %973 = vmatpush1.msra.mxu0 %v3057_v9  ;;  %2395 = vmatpush3.msra.mxu1 %v3072_v15 }
 0x27e   :  { %974 = vmatprep.subr.mxu0 %v3060_v11  ;;  %2396 = vmatprep.subr.mxu1 %v4000_v53 }
 0x27f   :  { %975 = vmatpush1.msra.mxu0 %v3062_v12  ;;  %2397 = vmatpush3.msra.mxu1 %v3081_v18 }
 0x280   :  { %976 = vmatprep.subr.mxu0 %v3066_v13  ;;  %2398 = vmatprep.subr.mxu1 %v4000_v53 }
 0x281   :  { %977 = vmatpush1.msra.mxu0 %v3069_v14  ;;  %2399 = vmatpush3.msra.mxu1 %v3091_v21 }
 0x282   :  { %978 = vmatprep.subr.mxu0 %v3075_v16  ;;  %2400 = vmatprep.subr.mxu1 %v4000_v53 }
 0x283   :  { %979 = vmatpush1.msra.mxu0 %v3079_v17  ;;  %2401 = vmatpush3.msra.mxu1 %v3101_v24 }
 0x284   :  { %980 = vmatprep.subr.mxu0 %v3084_v19  ;;  %2402 = vmatprep.subr.mxu1 %v4000_v53 }
 0x285   :  { %981 = vmatpush1.msra.mxu0 %v3088_v20  ;;  %2403 = vmatpush3.msra.mxu1 %v3111_v27 }
 0x286   :  { %982 = vmatprep.subr.mxu0 %v3094_v22  ;;  %2404 = vmatprep.subr.mxu1 %v4000_v53 }
 0x287   :  { %983 = vmatpush1.msra.mxu0 %v3098_v23  ;;  %2405 = vmatpush3.msra.mxu1 %v3121_v30 }
 0x288   :  { %984 = vmatprep.subr.mxu0 %v3104_v25  ;;  %2406 = vmatprep.subr.mxu1 %v4000_v53 }
 0x289   :  { %985 = vmatpush1.msra.mxu0 %v3108_v26  ;;  %2407 = vmatpush3.msra.mxu1 %v3131_v33 }
 0x28a   :  { %986 = vmatprep.subr.mxu0 %v3114_v28  ;;  %2408 = vmatprep.subr.mxu1 %v4000_v53 }
 0x28b   :  { %987 = vmatpush1.msra.mxu0 %v3118_v29  ;;  %2409 = vmatpush3.msra.mxu1 %v3141_v36 }
 0x28c   :  { %988 = vmatprep.subr.mxu0 %v3124_v31  ;;  %2410 = vmatprep.subr.mxu1 %v4000_v53 }
 0x28d   :  { %989 = vmatpush1.msra.mxu0 %v3128_v32  ;;  %2411 = vmatpush3.msra.mxu1 %v3151_v39 }
 0x28e   :  { %990 = vmatprep.subr.mxu0 %v3134_v34  ;;  %2412 = vmatprep.subr.mxu1 %v4000_v53 }
 0x28f   :  { %991 = vmatpush1.msra.mxu0 %v3138_v35  ;;  %2413 = vmatpush3.msra.mxu1 %v3161_v42 }
 0x290   :  { %992 = vmatprep.subr.mxu0 %v3144_v37  ;;  %2414 = vmatprep.subr.mxu1 %v4000_v53 }
 0x291   :  { %993 = vmatpush1.msra.mxu0 %v3148_v38  ;;  %2415 = vmatpush3.msra.mxu1 %v3171_v45 }
 0x292   :  { %994 = vmatprep.subr.mxu0 %v3154_v40  ;;  %2416 = vmatprep.subr.mxu1 %v4000_v53 }
 0x293   :  { %995 = vmatpush1.msra.mxu0 %v3158_v41  ;;  %2417 = vmatpush3.msra.mxu1 %v3181_v48 }
 0x294   :  { %996 = vmatprep.subr.mxu0 %v3164_v43  ;;  %2418 = vmatprep.subr.mxu1 %v4000_v53 }
 0x295   :  { %997 = vmatpush1.msra.mxu0 %v3168_v44  ;;  %2419 = vmatpush3.msra.mxu1 %v3191_v51 }
 0x296   :  { %998 = vmatprep.subr.mxu0 %v3174_v46  ;;  %2420 = vmatprep.subr.mxu1 %v4000_v53 }
 0x297   :  { %999 = vmatpush1.msra.mxu0 %v3178_v47  ;;  %2421 = vmatpush3.msra.mxu1 %v4011_v55 }
 0x298   :  { %1000 = vmatprep.subr.mxu0 %v4012_v58  ;;  %2422 = vmatprep.subr.mxu1 %v4000_v53 }
 0x299   :  { %1001 = vmatpush1.msra.mxu0 %v4013_v57  ;;  %2423 = vmatpush3.msra.mxu1 %v4014_v0 }
 0x29a   :  { %1002 = vmatprep.subr.mxu0 %v4015_v62  ;;  %2424 = vmatprep.subr.mxu1 %v4000_v53 }
 0x29b   :  { %1003 = vmatpush1.msra.mxu0 %v4016_v61  ;;  %1036 = vmatprep.mubr.f32.mxu0 %v4000_v53 }
 0x29c   :  { %2425 = vmatpush3.msra.mxu1 %v4017_v49  ;;  %2426 = vmatprep.mubr.msk.f32.mxu1 %vm2899_vm0, %v4000_v53 }
 0x29d   :  { %1148 = vmatprep.subr.mxu0 %v4018_v59  ;;  %2429 = vmatprep.subr.mxu1 %v4000_v53 }
 0x33c   :  { %v862_v52 = vpop.f32.mrf.mxu0  ;;  %v933_v56 = vpop.f32.mrf.mxu1 }
 0x33d   :  { %v863_v8 = vadd.f32 %v862_v52, %v4019_v4  ;;  %v934_v52 = vadd.f32 %v933_v56, %v3314_v5 }
 0x33e   :  { %v864_v2 = vpop.f32.mrf.mxu0  ;;  %v2393_v10 = vpop.f32.mrf.mxu1 }
 0x33f   :  { %v938_v6 = vrot.slane %v863_v8, 6  ;;  %v865_v1 = vadd.f32 %v864_v2, %v3306_v60  ;;  %v958_v10 = vrot.slane %v934_v52, 6  ;;  %v3570_v52 = vld [vmem:[#allocation9 + $0x168] sm:$0xff] }
 0x341   :  { %v940_v61 = vadd.f32 %v938_v6, %v4010_v54  ;;  %v948_v49 = vrot.slane %v865_v1, 6 }
 0x343   :  { %v2055_v62 = vmul.f32 -1.442695, %v940_v61  ;;  %v950_v0 = vadd.f32 %v948_v49, %v3311_v63  ;;  %v965_v49 = vrot.slane %v3399_v7, 7 }
 0x345   :  { %2637 = vpow2.f32 %v2055_v62  ;;  %v2056_v57 = vmul.f32 -1.442695, %v950_v0 }
 0x347   :  { %2639 = vpow2.f32 %v2056_v57 }
 0x352   :  { %v2638_v59 = vpop.eup %2637 }
 0x353   :  { %v944_v58 = vadd.f32 1.0, %v2638_v59 }
 0x354   :  { %v2640_v55 = vpop.eup %2639 }
 0x355   :  { %2641 = vrcp.f32 %v944_v58  ;;  %v954_v4 = vadd.f32 1.0, %v2640_v55  ;;  %v1850_v55 = vsel %vm170_vm1, %v3321_v3, %v3399_v7 }
 0x357   :  { %2643 = vrcp.f32 %v954_v4 }
 0x362   :  { %v2642_v8 = vpop.eup %2641 }
 0x363   :  { %v960_v47 = vmul.f32 %v2642_v8, %v958_v10  ;;  %v3573_v10 = vld [vmem:[#allocation9 + $0x178] sm:$0xff] }
 0x364   :  { %v2644_v61 = vpop.eup %2643  ;;  %v3576_v8 = vld [vmem:[#allocation9 + $0x158] sm:$0xff] }
 0x365   :  { %v961_v2 = vadd.f32 %v960_v47, %v3317_v50  ;;  %v963_v62 = vsub.f32 1.0, %v2644_v61  ;;  %v967_v6 = vmul.f32 %v2644_v61, %v965_v49  ;;  %v3583_v61 = vld [vmem:[#allocation9 + $0x160] sm:$0xff]  ;;  %v3590_v49 = vld [vmem:[#allocation9 + $0x138] sm:$0xff] }
 0x367   :  { %2645 = vtanh.f32 %v961_v2  ;;  %v3580_v2 = vld [vmem:[#allocation9 + $0x150] sm:$0xff] }
 0x374   :  { %v2646_v0 = vpop.eup %2645 }
 0x375   :  { %v964_v57 = vmul.f32 %v2646_v0, %v963_v62  ;;  %v3586_v62 = vld [vmem:[#allocation9 + $0x140] sm:$0xff]  ;;  %v3593_v0 = vld [vmem:[#allocation9 + $0x148] sm:$0xff] }
 0x377   :  { %v3476_v1 = vadd.f32 %v967_v6, %v964_v57  ;;  %v3596_v57 = vld [vmem:[#allocation9 + $0x128] sm:$0xff]  ;;  %v3600_v6 = vld [vmem:[#allocation9 + $0x120] sm:$0xff] }
 0x379   :  { %v970_v58 = vrot.slane %v3476_v1, 2  ;;  %v3484_v56 = vsel %vm172_vm2, %v1850_v55, %v3476_v1  ;;  %v3606_v55 = vld [vmem:[#allocation9 + $0x110] sm:$0xff] }
 0x37b   :  { %1037 = vmatmul.mubr.f32.vlgmr.msra.gmra.mxu0 %v970_v58  ;;  %2427 = vmatmul.mubr.f32.vlgmr.msra.gmra.mxu1 %v970_v58  ;;  %v3610_v58 = vld [vmem:[#allocation9 + $0x108] sm:$0xff] }
 0x37c   :  { %1149 = vmatpush1.msra.mxu0 %v3057_v9  ;;  %2430 = vmatpush3.msra.mxu1 %v3072_v15  ;;  %v4020_v9 = vld [vmem:[#allocation22_spill] sm:$0xff]  ;;  %v4025_v15 = vld [vmem:[#allocation25_spill] sm:$0xff] }
 0x37d   :  { %1150 = vmatprep.subr.mxu0 %v3060_v11  ;;  %2431 = vmatprep.subr.mxu1 %v4000_v53  ;;  %v4021_v11 = vld [vmem:[#allocation27_spill] sm:$0xff] }
 0x37e   :  { %1151 = vmatpush1.msra.mxu0 %v3062_v12  ;;  %2432 = vmatpush3.msra.mxu1 %v3081_v18  ;;  %v4022_v12 = vld [vmem:[#allocation23_spill] sm:$0xff]  ;;  %v3551_v18 = vld [vmem:[#allocation9 + $0x170] sm:$0xff] }
 0x37f   :  { %1152 = vmatprep.subr.mxu0 %v3066_v13  ;;  %2433 = vmatprep.subr.mxu1 %v4000_v53  ;;  %v4023_v13 = vld [vmem:[#allocation24_spill] sm:$0xff] }
 0x380   :  { %1153 = vmatpush1.msra.mxu0 %v3069_v14  ;;  %2434 = vmatpush3.msra.mxu1 %v3091_v21  ;;  %v4024_v14 = vld [vmem:[#allocation28_spill] sm:$0xff]  ;;  %v4028_v21 = vld [vmem:[#allocation30_spill] sm:$0xff] }
 0x381   :  { %1154 = vmatprep.subr.mxu0 %v3075_v16  ;;  %2435 = vmatprep.subr.mxu1 %v4000_v53  ;;  %v4026_v16 = vld [vmem:[#allocation26_spill] sm:$0xff] }
 0x382   :  { %1155 = vmatpush1.msra.mxu0 %v3079_v17  ;;  %2436 = vmatpush3.msra.mxu1 %v3101_v24  ;;  %v4027_v17 = vld [vmem:[#allocation29_spill] sm:$0xff] }
 0x383   :  { %1156 = vmatprep.subr.mxu0 %v3084_v19  ;;  %2437 = vmatprep.subr.mxu1 %v4000_v53 }
 0x384   :  { %1157 = vmatpush1.msra.mxu0 %v3088_v20  ;;  %2438 = vmatpush3.msra.mxu1 %v3111_v27 }
 0x385   :  { %1158 = vmatprep.subr.mxu0 %v3094_v22  ;;  %2439 = vmatprep.subr.mxu1 %v4000_v53 }
 0x386   :  { %1159 = vmatpush1.msra.mxu0 %v3098_v23  ;;  %2440 = vmatpush3.msra.mxu1 %v3121_v30 }
 0x387   :  { %1160 = vmatprep.subr.mxu0 %v3104_v25  ;;  %2441 = vmatprep.subr.mxu1 %v4000_v53 }
 0x388   :  { %1161 = vmatpush1.msra.mxu0 %v3108_v26  ;;  %2442 = vmatpush3.msra.mxu1 %v3131_v33 }
 0x389   :  { %1162 = vmatprep.subr.mxu0 %v3114_v28  ;;  %2443 = vmatprep.subr.mxu1 %v4000_v53 }
 0x38a   :  { %1163 = vmatpush1.msra.mxu0 %v3118_v29  ;;  %2444 = vmatpush3.msra.mxu1 %v3141_v36 }
 0x38b   :  { %1164 = vmatprep.subr.mxu0 %v3124_v31  ;;  %2445 = vmatprep.subr.mxu1 %v4000_v53 }
 0x38c   :  { %1165 = vmatpush1.msra.mxu0 %v3128_v32  ;;  %2446 = vmatpush3.msra.mxu1 %v3151_v39 }
 0x38d   :  { %1166 = vmatprep.subr.mxu0 %v3134_v34  ;;  %2447 = vmatprep.subr.mxu1 %v4000_v53 }
 0x38e   :  { %1167 = vmatpush1.msra.mxu0 %v3138_v35  ;;  %2448 = vmatpush3.msra.mxu1 %v3161_v42 }
 0x38f   :  { %1168 = vmatprep.subr.mxu0 %v3144_v37  ;;  %2449 = vmatprep.subr.mxu1 %v4000_v53 }
 0x390   :  { %1169 = vmatpush1.msra.mxu0 %v3148_v38  ;;  %2450 = vmatpush3.msra.mxu1 %v3171_v45 }
 0x391   :  { %1170 = vmatprep.subr.mxu0 %v3154_v40  ;;  %2451 = vmatprep.subr.mxu1 %v4000_v53 }
 0x392   :  { %1171 = vmatpush1.msra.mxu0 %v3158_v41  ;;  %2452 = vmatpush3.msra.mxu1 %v3181_v48 }
 0x393   :  { %1172 = vmatprep.subr.mxu0 %v3164_v43  ;;  %2453 = vmatprep.subr.mxu1 %v4000_v53 }
 0x394   :  { %1173 = vmatpush1.msra.mxu0 %v3168_v44  ;;  %2454 = vmatpush3.msra.mxu1 %v3191_v51  ;;  %v1141_v44 = vrot.slane %v3476_v1, 7  ;;  %v3603_v1 = vld [vmem:[#allocation9 + $0x130] sm:$0xff] }
 0x395   :  { %1174 = vmatprep.subr.mxu0 %v3174_v46  ;;  %2455 = vmatprep.subr.mxu1 %v4000_v53 }
 0x396   :  { %1175 = vmatpush1.msra.mxu0 %v4020_v9  ;;  %2456 = vmatpush3.msra.mxu1 %v4021_v11  ;;  %v3616_v9 = vld [vmem:[#allocation9 + $0xf8] sm:$0xff] }
 0x397   :  { %1176 = vmatprep.subr.mxu0 %v4022_v12  ;;  %2457 = vmatprep.subr.mxu1 %v4000_v53 }
 0x398   :  { %1177 = vmatpush1.msra.mxu0 %v4023_v13  ;;  %2458 = vmatpush3.msra.mxu1 %v4024_v14 }
 0x399   :  { %1178 = vmatprep.subr.mxu0 %v4025_v15  ;;  %2459 = vmatprep.subr.mxu1 %v4000_v53 }
 0x39a   :  { %1179 = vmatpush1.msra.mxu0 %v4026_v16  ;;  %1212 = vmatprep.mubr.f32.mxu0 %v4000_v53 }
 0x39b   :  { %2460 = vmatpush3.msra.mxu1 %v4027_v17  ;;  %2461 = vmatprep.mubr.msk.f32.mxu1 %vm2899_vm0, %v4000_v53 }
 0x39c   :  { %1324 = vmatprep.subr.mxu0 %v3551_v18  ;;  %2464 = vmatprep.subr.mxu1 %v4000_v53 }
 0x43b   :  { %v1038_v19 = vpop.f32.mrf.mxu0  ;;  %v1109_v20 = vpop.f32.mrf.mxu1 }
 0x43c   :  { %v1039_v22 = vadd.f32 %v1038_v19, %v4028_v21  ;;  %v1110_v35 = vadd.f32 %v1109_v20, %v3314_v5  ;;  %v3620_v19 = vld [vmem:[#allocation9 + $0xf0] sm:$0xff]  ;;  %v3623_v20 = vld [vmem:[#allocation9 + $0x100] sm:$0xff] }
 0x43d   :  { %v1040_v23 = vpop.f32.mrf.mxu0  ;;  %v2428_v24 = vpop.f32.mrf.mxu1 }
 0x43e   :  { %v1114_v25 = vrot.slane %v1039_v22, 5  ;;  %v1041_v26 = vadd.f32 %v1040_v23, %v3306_v60  ;;  %v1134_v37 = vrot.slane %v1110_v35, 5  ;;  %v3626_v22 = vld [vmem:[#allocation9 + $0xe0] sm:$0xff]  ;;  %v3630_v23 = vld [vmem:[#allocation9 + $0xd8] sm:$0xff]  ;;  %v3633_v24 = vld [vmem:[#allocation9 + $0xe8] sm:$0xff] }
 0x43f   :  { %v3672_v35 = vld [vmem:[#allocation9 + $0x68] sm:$0xff] }
 0x440   :  { %v1116_v27 = vadd.f32 %v1114_v25, %v4010_v54  ;;  %v1124_v29 = vrot.slane %v1041_v26, 5  ;;  %v3636_v25 = vld [vmem:[#allocation9 + $0xc8] sm:$0xff]  ;;  %v3640_v26 = vld [vmem:[#allocation9 + $0xc0] sm:$0xff] }
 0x442   :  { %v2057_v28 = vmul.f32 -1.442695, %v1116_v27  ;;  %v1126_v30 = vadd.f32 %v1124_v29, %v3311_v63  ;;  %v3643_v27 = vld [vmem:[#allocation9 + $0xd0] sm:$0xff]  ;;  %v3650_v29 = vld [vmem:[#allocation9 + $0xa8] sm:$0xff] }
 0x444   :  { %2647 = vpow2.f32 %v2057_v28  ;;  %v2058_v31 = vmul.f32 -1.442695, %v1126_v30  ;;  %v3646_v28 = vld [vmem:[#allocation9 + $0xb0] sm:$0xff]  ;;  %v3653_v30 = vld [vmem:[#allocation9 + $0xb8] sm:$0xff] }
 0x446   :  { %2649 = vpow2.f32 %v2058_v31  ;;  %v3656_v31 = vld [vmem:[#allocation9 + $0x98] sm:$0xff] }
 0x451   :  { %v2648_v32 = vpop.eup %2647 }
 0x452   :  { %v1120_v33 = vadd.f32 1.0, %v2648_v32  ;;  %v3660_v32 = vld [vmem:[#allocation9 + $0x90] sm:$0xff] }
 0x453   :  { %v2650_v34 = vpop.eup %2649 }
 0x454   :  { %2651 = vrcp.f32 %v1120_v33  ;;  %v1130_v36 = vadd.f32 1.0, %v2650_v34  ;;  %v3664_v33 = vld [vmem:[#allocation9 + $0x80] sm:$0xff]  ;;  %v3668_v34 = vld [vmem:[#allocation9 + $0x78] sm:$0xff] }
 0x456   :  { %2653 = vrcp.f32 %v1130_v36  ;;  %v3676_v36 = vld [vmem:[#allocation9 + $0x60] sm:$0xff] }
 0x461   :  { %v2652_v38 = vpop.eup %2651 }
 0x462   :  { %v1136_v39 = vmul.f32 %v2652_v38, %v1134_v37  ;;  %v3684_v37 = vld [vmem:[#allocation9 + $0x48] sm:$0xff]  ;;  %v3692_v38 = vld [vmem:[#allocation9 + $0x30] sm:$0xff] }
 0x463   :  { %v2654_v41 = vpop.eup %2653  ;;  %4029 = vst [vmem:[#allocation31_spill] sm:$0xff] %v3692_v38 }
 0x464   :  { %v1137_v40 = vadd.f32 %v1136_v39, %v3317_v50  ;;  %v1139_v43 = vsub.f32 1.0, %v2654_v41  ;;  %v1143_v3 = vmul.f32 %v2654_v41, %v1141_v44 }
 0x466   :  { %2655 = vtanh.f32 %v1137_v40 }
 0x473   :  { %v2656_v46 = vpop.eup %2655 }
 0x474   :  { %v1140_v47 = vmul.f32 %v2656_v46, %v1139_v43 }
 0x476   :  { %v3562_v7 = vadd.f32 %v1143_v3, %v1140_v47 }
 0x478   :  { %v1146_v4 = vrot.slane %v3562_v7, 3  ;;  %v3568_v59 = vsel %vm174_vm3, %v3484_v56, %v3562_v7  ;;  %v3613_v56 = vld [vmem:[#allocation9 + $0x118] sm:$0xff] }
 0x47a   :  { %1213 = vmatmul.mubr.f32.vlgmr.msra.gmra.mxu0 %v1146_v4  ;;  %2462 = vmatmul.mubr.f32.vlgmr.msra.gmra.mxu1 %v1146_v4 }
 0x47b   :  { %1325 = vmatpush1.msra.mxu0 %v3570_v52  ;;  %2465 = vmatpush3.msra.mxu1 %v3573_v10 }
 0x47c   :  { %1326 = vmatprep.subr.mxu0 %v3576_v8  ;;  %2466 = vmatprep.subr.mxu1 %v4000_v53 }
 0x47d   :  { %1327 = vmatpush1.msra.mxu0 %v3580_v2  ;;  %2467 = vmatpush3.msra.mxu1 %v3583_v61 }
 0x47e   :  { %1328 = vmatprep.subr.mxu0 %v3586_v62  ;;  %2468 = vmatprep.subr.mxu1 %v4000_v53 }
 0x47f   :  { %1329 = vmatpush1.msra.mxu0 %v3590_v49  ;;  %2469 = vmatpush3.msra.mxu1 %v3593_v0 }
 0x480   :  { %1330 = vmatprep.subr.mxu0 %v3596_v57  ;;  %2470 = vmatprep.subr.mxu1 %v4000_v53 }
 0x481   :  { %1331 = vmatpush1.msra.mxu0 %v3600_v6  ;;  %2471 = vmatpush3.msra.mxu1 %v3603_v1 }
 0x482   :  { %1332 = vmatprep.subr.mxu0 %v3606_v55  ;;  %2472 = vmatprep.subr.mxu1 %v4000_v53 }
 0x483   :  { %1333 = vmatpush1.msra.mxu0 %v3610_v58  ;;  %2473 = vmatpush3.msra.mxu1 %v3613_v56 }
 0x484   :  { %1334 = vmatprep.subr.mxu0 %v3616_v9  ;;  %2474 = vmatprep.subr.mxu1 %v4000_v53 }
 0x485   :  { %1335 = vmatpush1.msra.mxu0 %v3620_v19  ;;  %2475 = vmatpush3.msra.mxu1 %v3623_v20 }
 0x486   :  { %1336 = vmatprep.subr.mxu0 %v3626_v22  ;;  %2476 = vmatprep.subr.mxu1 %v4000_v53 }
 0x487   :  { %1337 = vmatpush1.msra.mxu0 %v3630_v23  ;;  %2477 = vmatpush3.msra.mxu1 %v3633_v24 }
 0x488   :  { %1338 = vmatprep.subr.mxu0 %v3636_v25  ;;  %2478 = vmatprep.subr.mxu1 %v4000_v53 }
 0x489   :  { %1339 = vmatpush1.msra.mxu0 %v3640_v26  ;;  %2479 = vmatpush3.msra.mxu1 %v3643_v27 }
 0x48a   :  { %1340 = vmatprep.subr.mxu0 %v3646_v28  ;;  %2480 = vmatprep.subr.mxu1 %v4000_v53 }
 0x48b   :  { %1341 = vmatpush1.msra.mxu0 %v3650_v29  ;;  %2481 = vmatpush3.msra.mxu1 %v3653_v30 }
 0x48c   :  { %1342 = vmatprep.subr.mxu0 %v3656_v31  ;;  %2482 = vmatprep.subr.mxu1 %v4000_v53 }
 0x48d   :  { %1343 = vmatpush1.msra.mxu0 %v3660_v32  ;;  %2483 = vmatpush3.msra.mxu1 %v3161_v42  ;;  %v3680_v42 = vld [vmem:[#allocation9 + $0x50] sm:$0xff] }
 0x48e   :  { %1344 = vmatprep.subr.mxu0 %v3664_v33  ;;  %2484 = vmatprep.subr.mxu1 %v4000_v53 }
 0x48f   :  { %1345 = vmatpush1.msra.mxu0 %v3668_v34  ;;  %2485 = vmatpush3.msra.mxu1 %v3171_v45  ;;  %v3688_v45 = vld [vmem:[#allocation9 + $0x38] sm:$0xff] }
 0x490   :  { %1346 = vmatprep.subr.mxu0 %v3672_v35  ;;  %2486 = vmatprep.subr.mxu1 %v4000_v53 }
 0x491   :  { %1347 = vmatpush1.msra.mxu0 %v3676_v36  ;;  %2487 = vmatpush3.msra.mxu1 %v3181_v48 }
 0x492   :  { %1348 = vmatprep.subr.mxu0 %v3680_v42  ;;  %2488 = vmatprep.subr.mxu1 %v4000_v53 }
 0x493   :  { %1349 = vmatpush1.msra.mxu0 %v3684_v37  ;;  %2489 = vmatpush3.msra.mxu1 %v3191_v51 }
 0x494   :  { %1350 = vmatprep.subr.mxu0 %v3688_v45  ;;  %2490 = vmatprep.subr.mxu1 %v4000_v53 }
 0x495   :  { %1351 = vmatpush1.msra.mxu0 %v3692_v38  ;;  %2491 = vmatpush3.msra.mxu1 %v4021_v11 }
 0x496   :  { %1352 = vmatprep.subr.mxu0 %v4022_v12  ;;  %2492 = vmatprep.subr.mxu1 %v4000_v53 }
 0x497   :  { %1353 = vmatpush1.msra.mxu0 %v4023_v13  ;;  %2493 = vmatpush3.msra.mxu1 %v4024_v14 }
 0x498   :  { %1354 = vmatprep.subr.mxu0 %v4025_v15  ;;  %2494 = vmatprep.subr.mxu1 %v4000_v53 }
 0x499   :  { %1355 = vmatpush1.msra.mxu0 %v4026_v16  ;;  %1388 = vmatprep.mubr.f32.mxu0 %v4000_v53 }
 0x49a   :  { %2495 = vmatpush3.msra.mxu1 %v4027_v17  ;;  %2496 = vmatprep.mubr.msk.f32.mxu1 %vm2899_vm0, %v4000_v53 }
 0x49b   :  { %1500 = vmatprep.subr.mxu0 %v3551_v18  ;;  %2499 = vmatprep.subr.mxu1 %v4000_v53 }
 0x53a   :  { %v1214_v48 = vpop.f32.mrf.mxu0  ;;  %v1285_v51 = vpop.f32.mrf.mxu1 }
 0x53b   :  { %v1215_v11 = vadd.f32 %v1214_v48, %v4028_v21  ;;  %v1286_v47 = vadd.f32 %v1285_v51, %v3314_v5 }
 0x53c   :  { %v1216_v12 = vpop.f32.mrf.mxu0  ;;  %v2463_v13 = vpop.f32.mrf.mxu1 }
 0x53d   :  { %v1290_v14 = vrot.slane %v1215_v11, 4  ;;  %v1217_v15 = vadd.f32 %v1216_v12, %v3306_v60  ;;  %v1310_v4 = vrot.slane %v1286_v47, 4  ;;  %v3788_v47 = vld [vmem:[#allocation9 + $0x20] sm:$0xff] }
 0x53e   :  { %4031 = vst [vmem:[#allocation22_spill] sm:$0xff] %v3788_v47 }
 0x53f   :  { %v1292_v16 = vadd.f32 %v1290_v14, %v4010_v54  ;;  %v1300_v17 = vrot.slane %v1217_v15, 4  ;;  %v1317_v15 = vrot.slane %v3562_v7, 7  ;;  %v3761_v7 = vld [vmem:[#allocation9 + $0xa0] sm:$0xff] }
 0x541   :  { %v2059_v39 = vmul.f32 -1.442695, %v1292_v16  ;;  %v1302_v40 = vadd.f32 %v1300_v17, %v3311_v63 }
 0x543   :  { %2657 = vpow2.f32 %v2059_v39  ;;  %v2060_v41 = vmul.f32 -1.442695, %v1302_v40 }
 0x545   :  { %2659 = vpow2.f32 %v2060_v41 }
 0x550   :  { %v2658_v43 = vpop.eup %2657 }
 0x551   :  { %v1296_v44 = vadd.f32 1.0, %v2658_v43  ;;  %v3773_v43 = vld [vmem:[#allocation9 + $0x70] sm:$0xff] }
 0x552   :  { %v2660_v46 = vpop.eup %2659 }
 0x553   :  { %2661 = vrcp.f32 %v1296_v44  ;;  %v1306_v3 = vadd.f32 1.0, %v2660_v46  ;;  %v3779_v44 = vld [vmem:[#allocation9 + $0x58] sm:$0xff]  ;;  %v3785_v46 = vld [vmem:[#allocation9 + $0x40] sm:$0xff] }
 0x554   :  { %4030 = vst [vmem:[#allocation21_spill] sm:$0xff] %v3785_v46 }
 0x555   :  { %2663 = vrcp.f32 %v1306_v3  ;;  %v3792_v3 = vld [vmem:[#allocation9 + $0x18] sm:$0xff] }
 0x556   :  { %4032 = vst [vmem:[#allocation27_spill] sm:$0xff] %v3792_v3 }
 0x560   :  { %v2662_v48 = vpop.eup %2661 }
 0x561   :  { %v1312_v11 = vmul.f32 %v2662_v48, %v1310_v4  ;;  %v3795_v4 = vld [vmem:[#allocation9 + $0x28] sm:$0xff] }
 0x562   :  { %v2664_v13 = vpop.eup %2663  ;;  %4033 = vst [vmem:[#allocation23_spill] sm:$0xff] %v3795_v4  ;;  %v3798_v48 = vld [vmem:[#allocation9 + $0x8] sm:$0xff] }
 0x563   :  { %v1313_v12 = vadd.f32 %v1312_v11, %v3317_v50  ;;  %v1315_v14 = vsub.f32 1.0, %v2664_v13  ;;  %v1319_v17 = vmul.f32 %v2664_v13, %v1317_v15  ;;  %4034 = vst [vmem:[#allocation24_spill] sm:$0xff] %v3798_v48  ;;  %v3802_v11 = vld [vmem:[#allocation9] sm:$0xff] }
 0x564   :  { %4035 = vst [vmem:[#allocation28_spill] sm:$0xff] %v3802_v11 }
 0x565   :  { %2665 = vtanh.f32 %v1313_v12  ;;  %v3806_v12 = vld [vmem:[#allocation9 + $0x10] sm:$0xff] }
 0x566   :  { %4036 = vst [vmem:[#allocation25_spill] sm:$0xff] %v3806_v12 }
 0x572   :  { %v2666_v16 = vpop.eup %2665 }
 0x573   :  { %v1316_v39 = vmul.f32 %v2666_v16, %v1315_v14 }
 0x575   :  { %v3716_v40 = vadd.f32 %v1319_v17, %v1316_v39 }
 0x577   :  { %v1322_v41 = vrot.slane %v3716_v40, 4  ;;  %v3722_v51 = vsel %vm176_vm4, %v3568_v59, %v3716_v40  ;;  %v3767_v59 = vld [vmem:[#allocation9 + $0x88] sm:$0xff] }
 0x579   :  { %1389 = vmatmul.mubr.f32.vlgmr.msra.gmra.mxu0 %v1322_v41  ;;  %2497 = vmatmul.mubr.f32.vlgmr.msra.gmra.mxu1 %v1322_v41 }
 0x57a   :  { %1501 = vmatpush1.msra.mxu0 %v3570_v52  ;;  %2500 = vmatpush3.msra.mxu1 %v3573_v10 }
 0x57b   :  { %1502 = vmatprep.subr.mxu0 %v3576_v8  ;;  %2501 = vmatprep.subr.mxu1 %v4000_v53 }
 0x57c   :  { %1503 = vmatpush1.msra.mxu0 %v3580_v2  ;;  %2502 = vmatpush3.msra.mxu1 %v3583_v61 }
 0x57d   :  { %1504 = vmatprep.subr.mxu0 %v3586_v62  ;;  %2503 = vmatprep.subr.mxu1 %v4000_v53 }
 0x57e   :  { %1505 = vmatpush1.msra.mxu0 %v3590_v49  ;;  %2504 = vmatpush3.msra.mxu1 %v3593_v0 }
 0x57f   :  { %1506 = vmatprep.subr.mxu0 %v3596_v57  ;;  %2505 = vmatprep.subr.mxu1 %v4000_v53 }
 0x580   :  { %1507 = vmatpush1.msra.mxu0 %v3600_v6  ;;  %2506 = vmatpush3.msra.mxu1 %v3603_v1 }
 0x581   :  { %1508 = vmatprep.subr.mxu0 %v3606_v55  ;;  %2507 = vmatprep.subr.mxu1 %v4000_v53 }
 0x582   :  { %1509 = vmatpush1.msra.mxu0 %v3610_v58  ;;  %2508 = vmatpush3.msra.mxu1 %v3613_v56 }
 0x583   :  { %1510 = vmatprep.subr.mxu0 %v3616_v9  ;;  %2509 = vmatprep.subr.mxu1 %v4000_v53 }
 0x584   :  { %1511 = vmatpush1.msra.mxu0 %v3620_v19  ;;  %2510 = vmatpush3.msra.mxu1 %v3623_v20 }
 0x585   :  { %1512 = vmatprep.subr.mxu0 %v3626_v22  ;;  %2511 = vmatprep.subr.mxu1 %v4000_v53 }
 0x586   :  { %1513 = vmatpush1.msra.mxu0 %v3630_v23  ;;  %2512 = vmatpush3.msra.mxu1 %v3633_v24 }
 0x587   :  { %1514 = vmatprep.subr.mxu0 %v3636_v25  ;;  %2513 = vmatprep.subr.mxu1 %v4000_v53 }
 0x588   :  { %1515 = vmatpush1.msra.mxu0 %v3640_v26  ;;  %2514 = vmatpush3.msra.mxu1 %v3643_v27 }
 0x589   :  { %1516 = vmatprep.subr.mxu0 %v3646_v28  ;;  %2515 = vmatprep.subr.mxu1 %v4000_v53 }
 0x58a   :  { %1517 = vmatpush1.msra.mxu0 %v3650_v29  ;;  %2516 = vmatpush3.msra.mxu1 %v3653_v30 }
 0x58b   :  { %1518 = vmatprep.subr.mxu0 %v3656_v31  ;;  %2517 = vmatprep.subr.mxu1 %v4000_v53 }
 0x58c   :  { %1519 = vmatpush1.msra.mxu0 %v3660_v32  ;;  %2518 = vmatpush3.msra.mxu1 %v3761_v7 }
 0x58d   :  { %1520 = vmatprep.subr.mxu0 %v3664_v33  ;;  %2519 = vmatprep.subr.mxu1 %v4000_v53 }
 0x58e   :  { %1521 = vmatpush1.msra.mxu0 %v3668_v34  ;;  %2520 = vmatpush3.msra.mxu1 %v3767_v59 }
 0x58f   :  { %1522 = vmatprep.subr.mxu0 %v3672_v35  ;;  %2521 = vmatprep.subr.mxu1 %v4000_v53 }
 0x590   :  { %1523 = vmatpush1.msra.mxu0 %v3676_v36  ;;  %2522 = vmatpush3.msra.mxu1 %v3773_v43 }
 0x591   :  { %1524 = vmatprep.subr.mxu0 %v3680_v42  ;;  %2523 = vmatprep.subr.mxu1 %v4000_v53 }
 0x592   :  { %1525 = vmatpush1.msra.mxu0 %v3684_v37  ;;  %2524 = vmatpush3.msra.mxu1 %v3779_v44 }
 0x593   :  { %1526 = vmatprep.subr.mxu0 %v3688_v45  ;;  %2525 = vmatprep.subr.mxu1 %v4000_v53 }
 0x594   :  { %1527 = vmatpush1.msra.mxu0 %v3692_v38  ;;  %2526 = vmatpush3.msra.mxu1 %v3785_v46 }
 0x595   :  { %1528 = vmatprep.subr.mxu0 %v3788_v47  ;;  %2527 = vmatprep.subr.mxu1 %v4000_v53 }
 0x596   :  { %1529 = vmatpush1.msra.mxu0 %v3792_v3  ;;  %2528 = vmatpush3.msra.mxu1 %v3795_v4 }
 0x597   :  { %1530 = vmatprep.subr.mxu0 %v3798_v48  ;;  %2529 = vmatprep.subr.mxu1 %v4000_v53 }
 0x598   :  { %1531 = vmatpush1.msra.mxu0 %v3802_v11  ;;  %1564 = vmatprep.mubr.f32.mxu0 %v4000_v53 }
 0x599   :  { %2530 = vmatpush3.msra.mxu1 %v3806_v12  ;;  %2531 = vmatprep.mubr.msk.f32.mxu1 %vm2899_vm0, %v4000_v53 }
 0x59a   :  { %1676 = vmatprep.subr.mxu0 %v3551_v18  ;;  %2534 = vmatprep.subr.mxu1 %v4000_v53 }
 0x639   :  { %v1390_v13 = vpop.f32.mrf.mxu0  ;;  %v1461_v14 = vpop.f32.mrf.mxu1 }
 0x63a   :  { %v1391_v15 = vadd.f32 %v1390_v13, %v4028_v21  ;;  %v1462_v13 = vadd.f32 %v1461_v14, %v3314_v5  ;;  %v1868_v14 = vld [vmem:[#allocation10 + $0x58] sm:$0xff] }
 0x63b   :  { %v1392_v16 = vpop.f32.mrf.mxu0  ;;  %v2498_v39 = vpop.f32.mrf.mxu1 }
 0x63c   :  { %v1466_v17 = vrot.slane %v1391_v15, 3  ;;  %v1393_v41 = vadd.f32 %v1392_v16, %v3306_v60  ;;  %v1486_v39 = vrot.slane %v1462_v13, 3  ;;  %v1866_v13 = vld [vmem:[#allocation10 + $0x48] sm:$0xff] }
 0x63e   :  { %v1468_v11 = vadd.f32 %v1466_v17, %v4010_v54  ;;  %v1476_v12 = vrot.slane %v1393_v41, 3 }
 0x640   :  { %v2061_v48 = vmul.f32 -1.442695, %v1468_v11  ;;  %v1478_v4 = vadd.f32 %v1476_v12, %v3311_v63  ;;  %v1493_v12 = vrot.slane %v3716_v40, 7 }
 0x642   :  { %2667 = vpow2.f32 %v2061_v48  ;;  %v2062_v3 = vmul.f32 -1.442695, %v1478_v4 }
 0x644   :  { %2669 = vpow2.f32 %v2062_v3 }
 0x64f   :  { %v2668_v18 = vpop.eup %2667 }
 0x650   :  { %v1472_v47 = vadd.f32 1.0, %v2668_v18  ;;  %v1867_v18 = vld [vmem:[#allocation10 + $0x50] sm:$0xff] }
 0x651   :  { %v2670_v46 = vpop.eup %2669 }
 0x652   :  { %2671 = vrcp.f32 %v1472_v47  ;;  %v1482_v21 = vadd.f32 1.0, %v2670_v46 }
 0x654   :  { %2673 = vrcp.f32 %v1482_v21  ;;  %v4037_v21 = vld [vmem:[#allocation31_spill] sm:$0xff] }
 0x65f   :  { %v2672_v15 = vpop.eup %2671 }
 0x660   :  { %v1488_v38 = vmul.f32 %v2672_v15, %v1486_v39  ;;  %v1865_v39 = vld [vmem:[#allocation10 + $0x40] sm:$0xff]  ;;  %v1864_v15 = vld [vmem:[#allocation10 + $0x38] sm:$0xff] }
 0x661   :  { %v2674_v11 = vpop.eup %2673 }
 0x662   :  { %v1489_v16 = vadd.f32 %v1488_v38, %v3317_v50  ;;  %v1491_v48 = vsub.f32 1.0, %v2674_v11  ;;  %v1495_v17 = vmul.f32 %v2674_v11, %v1493_v12  ;;  %v1862_v11 = vld [vmem:[#allocation10 + $0x28] sm:$0xff]  ;;  %v1860_v12 = vld [vmem:[#allocation10 + $0x18] sm:$0xff] }
 0x664   :  { %2675 = vtanh.f32 %v1489_v16  ;;  %v1863_v16 = vld [vmem:[#allocation10 + $0x30] sm:$0xff] }
 0x671   :  { %v2676_v4 = vpop.eup %2675 }
 0x672   :  { %v1492_v3 = vmul.f32 %v2676_v4, %v1491_v48  ;;  %v1861_v48 = vld [vmem:[#allocation10 + $0x20] sm:$0xff]  ;;  %v1859_v4 = vld [vmem:[#allocation10 + $0x10] sm:$0xff] }
 0x674   :  { %v3820_v41 = vadd.f32 %v1495_v17, %v1492_v3  ;;  %v1858_v3 = vld [vmem:[#allocation10 + $0x8] sm:$0xff]  ;;  %v1857_v17 = vld [vmem:[#allocation10] sm:$0xff] }
 0x676   :  { %v1498_v47 = vrot.slane %v3820_v41, 5  ;;  %v3826_v46 = vsel %vm178_vm5, %v3722_v51, %v3820_v41 }
 0x678   :  { %1565 = vmatmul.mubr.f32.vlgmr.msra.gmra.mxu0 %v1498_v47  ;;  %2532 = vmatmul.mubr.f32.vlgmr.msra.gmra.mxu1 %v1498_v47 }
 0x679   :  { %1677 = vmatpush1.msra.mxu0 %v3570_v52  ;;  %2535 = vmatpush3.msra.mxu1 %v3573_v10  ;;  %v4038_v52 = vld [vmem:[#allocation21_spill] sm:$0xff]  ;;  %v4039_v10 = vld [vmem:[#allocation22_spill] sm:$0xff] }
 0x67a   :  { %1678 = vmatprep.subr.mxu0 %v3576_v8  ;;  %2536 = vmatprep.subr.mxu1 %v4000_v53  ;;  %v4040_v8 = vld [vmem:[#allocation27_spill] sm:$0xff] }
 0x67b   :  { %1679 = vmatpush1.msra.mxu0 %v3580_v2  ;;  %2537 = vmatpush3.msra.mxu1 %v3583_v61  ;;  %v4041_v2 = vld [vmem:[#allocation23_spill] sm:$0xff]  ;;  %v4042_v61 = vld [vmem:[#allocation24_spill] sm:$0xff] }
 0x67c   :  { %1680 = vmatprep.subr.mxu0 %v3586_v62  ;;  %2538 = vmatprep.subr.mxu1 %v4000_v53  ;;  %v4043_v62 = vld [vmem:[#allocation28_spill] sm:$0xff] }
 0x67d   :  { %1681 = vmatpush1.msra.mxu0 %v3590_v49  ;;  %2539 = vmatpush3.msra.mxu1 %v3593_v0  ;;  %v4044_v49 = vld [vmem:[#allocation25_spill] sm:$0xff] }
 0x67e   :  { %1682 = vmatprep.subr.mxu0 %v3596_v57  ;;  %2540 = vmatprep.subr.mxu1 %v4000_v53 }
 0x67f   :  { %1683 = vmatpush1.msra.mxu0 %v3600_v6  ;;  %2541 = vmatpush3.msra.mxu1 %v3603_v1  ;;  %v4045_v6 = vld [vmem:[#allocation30_spill] sm:$0xff] }
 0x680   :  { %1684 = vmatprep.subr.mxu0 %v3606_v55  ;;  %2542 = vmatprep.subr.mxu1 %v4000_v53 }
 0x681   :  { %1685 = vmatpush1.msra.mxu0 %v3610_v58  ;;  %2543 = vmatpush3.msra.mxu1 %v3613_v56 }
 0x682   :  { %1686 = vmatprep.subr.mxu0 %v3616_v9  ;;  %2544 = vmatprep.subr.mxu1 %v4000_v53 }
 0x683   :  { %1687 = vmatpush1.msra.mxu0 %v3620_v19  ;;  %2545 = vmatpush3.msra.mxu1 %v3623_v20 }
 0x684   :  { %1688 = vmatprep.subr.mxu0 %v3626_v22  ;;  %2546 = vmatprep.subr.mxu1 %v4000_v53 }
 0x685   :  { %1689 = vmatpush1.msra.mxu0 %v3630_v23  ;;  %2547 = vmatpush3.msra.mxu1 %v3633_v24 }
 0x686   :  { %1690 = vmatprep.subr.mxu0 %v3636_v25  ;;  %2548 = vmatprep.subr.mxu1 %v4000_v53 }
 0x687   :  { %1691 = vmatpush1.msra.mxu0 %v3640_v26  ;;  %2549 = vmatpush3.msra.mxu1 %v3643_v27 }
 0x688   :  { %1692 = vmatprep.subr.mxu0 %v3646_v28  ;;  %2550 = vmatprep.subr.mxu1 %v4000_v53 }
 0x689   :  { %1693 = vmatpush1.msra.mxu0 %v3650_v29  ;;  %2551 = vmatpush3.msra.mxu1 %v3653_v30 }
 0x68a   :  { %1694 = vmatprep.subr.mxu0 %v3656_v31  ;;  %2552 = vmatprep.subr.mxu1 %v4000_v53 }
 0x68b   :  { %1695 = vmatpush1.msra.mxu0 %v3660_v32  ;;  %2553 = vmatpush3.msra.mxu1 %v3761_v7  ;;  %v1872_v7 = vld [vmem:[#allocation10 + $0x78] sm:$0xff] }
 0x68c   :  { %1696 = vmatprep.subr.mxu0 %v3664_v33  ;;  %2554 = vmatprep.subr.mxu1 %v4000_v53 }
 0x68d   :  { %1697 = vmatpush1.msra.mxu0 %v3668_v34  ;;  %2555 = vmatpush3.msra.mxu1 %v3767_v59  ;;  %v1871_v59 = vld [vmem:[#allocation10 + $0x70] sm:$0xff] }
 0x68e   :  { %1698 = vmatprep.subr.mxu0 %v3672_v35  ;;  %2556 = vmatprep.subr.mxu1 %v4000_v53 }
 0x68f   :  { %1699 = vmatpush1.msra.mxu0 %v3676_v36  ;;  %2557 = vmatpush3.msra.mxu1 %v3773_v43  ;;  %v1669_v36 = vrot.slane %v3820_v41, 7  ;;  %v1870_v43 = vld [vmem:[#allocation10 + $0x68] sm:$0xff] }
 0x690   :  { %1700 = vmatprep.subr.mxu0 %v3680_v42  ;;  %2558 = vmatprep.subr.mxu1 %v4000_v53 }
 0x691   :  { %1701 = vmatpush1.msra.mxu0 %v3684_v37  ;;  %2559 = vmatpush3.msra.mxu1 %v3779_v44  ;;  %v1869_v44 = vld [vmem:[#allocation10 + $0x60] sm:$0xff] }
 0x692   :  { %1702 = vmatprep.subr.mxu0 %v3688_v45  ;;  %2560 = vmatprep.subr.mxu1 %v4000_v53 }
 0x693   :  { %1703 = vmatpush1.msra.mxu0 %v4037_v21  ;;  %2561 = vmatpush3.msra.mxu1 %v4038_v52 }
 0x694   :  { %1704 = vmatprep.subr.mxu0 %v4039_v10  ;;  %2562 = vmatprep.subr.mxu1 %v4000_v53 }
 0x695   :  { %1705 = vmatpush1.msra.mxu0 %v4040_v8  ;;  %2563 = vmatpush3.msra.mxu1 %v4041_v2 }
 0x696   :  { %1706 = vmatprep.subr.mxu0 %v4042_v61  ;;  %2564 = vmatprep.subr.mxu1 %v4000_v53 }
 0x697   :  { %1707 = vmatpush1.msra.mxu0 %v4043_v62  ;;  %1740 = vmatprep.mubr.f32.mxu0 %v4000_v53 }
 0x698   :  { %2565 = vmatpush3.msra.mxu1 %v4044_v49  ;;  %2566 = vmatprep.mubr.msk.f32.mxu1 %vm2899_vm0, %v4000_v53 }
 0x699   :  { %2569 = vmatprep.subr.mxu0 %v4000_v53 }
 0x738   :  { %v1566_v0 = vpop.f32.mrf.mxu0  ;;  %v1637_v57 = vpop.f32.mrf.mxu1 }
 0x739   :  { %v1567_v1 = vadd.f32 %v1566_v0, %v4045_v6  ;;  %v1638_v28 = vadd.f32 %v1637_v57, %v3314_v5 }
 0x73a   :  { %v1568_v55 = vpop.f32.mrf.mxu0  ;;  %v2533_v58 = vpop.f32.mrf.mxu1 }
 0x73b   :  { %v1642_v56 = vrot.slane %v1567_v1, 2  ;;  %v1569_v9 = vadd.f32 %v1568_v55, %v3306_v60  ;;  %v1662_v30 = vrot.slane %v1638_v28, 2 }
 0x73d   :  { %v1644_v19 = vadd.f32 %v1642_v56, %v4010_v54  ;;  %v1652_v22 = vrot.slane %v1569_v9, 2 }
 0x73f   :  { %v2063_v20 = vmul.f32 -1.442695, %v1644_v19  ;;  %v1654_v23 = vadd.f32 %v1652_v22, %v3311_v63 }
 0x741   :  { %2677 = vpow2.f32 %v2063_v20  ;;  %v2064_v24 = vmul.f32 -1.442695, %v1654_v23 }
 0x743   :  { %2679 = vpow2.f32 %v2064_v24 }
 0x74e   :  { %v2678_v25 = vpop.eup %2677 }
 0x74f   :  { %v1648_v26 = vadd.f32 1.0, %v2678_v25 }
 0x750   :  { %v2680_v27 = vpop.eup %2679 }
 0x751   :  { %2681 = vrcp.f32 %v1648_v26  ;;  %v1658_v29 = vadd.f32 1.0, %v2680_v27 }
 0x753   :  { %2683 = vrcp.f32 %v1658_v29 }
 0x75e   :  { %v2682_v31 = vpop.eup %2681 }
 0x75f   :  { %v1664_v32 = vmul.f32 %v2682_v31, %v1662_v30 }
 0x760   :  { %v2684_v34 = vpop.eup %2683 }
 0x761   :  { %v1665_v33 = vadd.f32 %v1664_v32, %v3317_v50  ;;  %v1667_v35 = vsub.f32 1.0, %v2684_v34  ;;  %v1671_v45 = vmul.f32 %v2684_v34, %v1669_v36 }
 0x763   :  { %2685 = vtanh.f32 %v1665_v33 }
 0x770   :  { %v2686_v42 = vpop.eup %2685 }
 0x771   :  { %v1668_v37 = vmul.f32 %v2686_v42, %v1667_v35 }
 0x773   :  { %v3901_v38 = vadd.f32 %v1671_v45, %v1668_v37 }
 0x775   :  { %v1674_v40 = vrot.slane %v3901_v38, 6  ;;  %v3907_v51 = vsel %vm180_vm6, %v3826_v46, %v3901_v38 }
 0x777   :  { %1741 = vmatmul.mubr.f32.vlgmr.msra.gmra.mxu0 %v1674_v40  ;;  %2567 = vmatmul.mubr.f32.vlgmr.msra.gmra.mxu1 %v1674_v40 }
 0x778   :  { %2601 = vmatprep.mubr.msk.f32.mxu0 %vm2899_vm0, %v4000_v53  ;;  %2570 = vmatpush3.msra.mxu0 %v1872_v7 }
 0x779   :  { %2571 = vmatprep.subr.mxu0 %v4000_v53 }
 0x77a   :  { %2572 = vmatpush3.msra.mxu0 %v1871_v59 }
 0x77b   :  { %2573 = vmatprep.subr.mxu0 %v4000_v53 }
 0x77c   :  { %2574 = vmatpush3.msra.mxu0 %v1870_v43 }
 0x77d   :  { %2575 = vmatprep.subr.mxu0 %v4000_v53 }
 0x77e   :  { %2576 = vmatpush3.msra.mxu0 %v1869_v44 }
 0x77f   :  { %2577 = vmatprep.subr.mxu0 %v4000_v53 }
 0x780   :  { %2578 = vmatpush3.msra.mxu0 %v1868_v14 }
 0x781   :  { %2579 = vmatprep.subr.mxu0 %v4000_v53 }
 0x782   :  { %2580 = vmatpush3.msra.mxu0 %v1867_v18 }
 0x783   :  { %2581 = vmatprep.subr.mxu0 %v4000_v53 }
 0x784   :  { %2582 = vmatpush3.msra.mxu0 %v1866_v13 }
 0x785   :  { %2583 = vmatprep.subr.mxu0 %v4000_v53 }
 0x786   :  { %2584 = vmatpush3.msra.mxu0 %v1865_v39 }
 0x787   :  { %2585 = vmatprep.subr.mxu0 %v4000_v53 }
 0x788   :  { %2586 = vmatpush3.msra.mxu0 %v1864_v15 }
 0x789   :  { %2587 = vmatprep.subr.mxu0 %v4000_v53 }
 0x78a   :  { %2588 = vmatpush3.msra.mxu0 %v1863_v16 }
 0x78b   :  { %2589 = vmatprep.subr.mxu0 %v4000_v53 }
 0x78c   :  { %2590 = vmatpush3.msra.mxu0 %v1862_v11 }
 0x78d   :  { %2591 = vmatprep.subr.mxu0 %v4000_v53 }
 0x78e   :  { %2592 = vmatpush3.msra.mxu0 %v1861_v48 }
 0x78f   :  { %2593 = vmatprep.subr.mxu0 %v4000_v53 }
 0x790   :  { %2594 = vmatpush3.msra.mxu0 %v1860_v12 }
 0x791   :  { %2595 = vmatprep.subr.mxu0 %v4000_v53 }
 0x792   :  { %2596 = vmatpush3.msra.mxu0 %v1859_v4 }
 0x793   :  { %2597 = vmatprep.subr.mxu0 %v4000_v53 }
 0x794   :  { %2598 = vmatpush3.msra.mxu0 %v1858_v3 }
 0x795   :  { %2599 = vmatprep.subr.mxu0 %v4000_v53 }
 0x796   :  { %2600 = vmatpush3.msra.mxu0 %v1857_v17 }
 0x837   :  { %v1742_v41 = vpop.f32.mrf.mxu0  ;;  %v1813_v47 = vpop.f32.mrf.mxu1 }
 0x838   :  { %v1743_v46 = vadd.f32 %v1742_v41, %v4045_v6  ;;  %v1814_v6 = vadd.f32 %v1813_v47, %v3314_v5  ;;  %v4046_v5 = vlaneseq }
 0x839   :  { %v1744_v21 = vpop.f32.mrf.mxu0  ;;  %v2568_v52 = vpop.f32.mrf.mxu1 }
 0x83a   :  { %v1818_v10 = vrot.slane %v1743_v46, 1  ;;  %v1745_v8 = vadd.f32 %v1744_v21, %v3306_v60  ;;  %v1838_v58 = vrot.slane %v1814_v6, 1  ;;  %v1951_v26 = vand.u32 127, %v4046_v5 }
 0x83c   :  { %v1820_v2 = vadd.f32 %v1818_v10, %v4010_v54  ;;  %v1828_v62 = vrot.slane %v1745_v8, 1  ;;  %vm1952_vm8 = vcmp.lt.s32.totalorder %v1951_v26, 64 }
 0x83e   :  { %v2065_v61 = vmul.f32 -1.442695, %v1820_v2  ;;  %v1830_v49 = vadd.f32 %v1828_v62, %v3311_v63  ;;  %v1845_v63 = vrot.slane %v3901_v38, 7 }
 0x840   :  { %2687 = vpow2.f32 %v2065_v61  ;;  %v2066_v0 = vmul.f32 -1.442695, %v1830_v49 }
 0x842   :  { %2689 = vpow2.f32 %v2066_v0 }
 0x84d   :  { %v2688_v53 = vpop.eup %2687 }
 0x84e   :  { %v1824_v57 = vadd.f32 1.0, %v2688_v53 }
 0x84f   :  { %v2690_v1 = vpop.eup %2689 }
 0x850   :  { %2691 = vrcp.f32 %v1824_v57  ;;  %v1834_v55 = vadd.f32 1.0, %v2690_v1 }
 0x852   :  { %2693 = vrcp.f32 %v1834_v55 }
 0x85d   :  { %v2692_v56 = vpop.eup %2691 }
 0x85e   :  { %v1840_v9 = vmul.f32 %v2692_v56, %v1838_v58 }
 0x85f   :  { %v2694_v54 = vpop.eup %2693 }
 0x860   :  { %v1841_v60 = vadd.f32 %v1840_v9, %v3317_v50  ;;  %v1843_v19 = vsub.f32 1.0, %v2694_v54  ;;  %v1847_v23 = vmul.f32 %v2694_v54, %v1845_v63  ;;  %v2067_v50 = vld [vmem:[%s3953_s8] ss:$0 sm:$0xff] }
 0x862   :  { %2695 = vtanh.f32 %v1841_v60 }
 0x86f   :  { %v2696_v20 = vpop.eup %2695 }
 0x870   :  { %v1844_v22 = vmul.f32 %v2696_v20, %v1843_v19 }
 0x872   :  { %v1848_v24 = vadd.f32 %v1847_v23, %v1844_v22 }
 0x874   :  { %v1856_v25 = vsel %vm182_vm7, %v3907_v51, %v1848_v24  ;;  %1849 = vst [vmem:[#allocation13 - $0x7] sm:$0x80] %v1848_v24 }
 0x875   :  { %2602 = vmatmul.mubr.f32.vlgmr.msra.gmra.mxu0 %v1856_v25 }
 0x935   :  { %v1946_v27 = vpop.f32.mrf.mxu0 }
 0x936   :  { %v1947_v28 = vadd.f32 %v2067_v50, %v1946_v27 }
 0x937   :  { %v2603_v29 = vpop.f32.mrf.mxu0 }
 0x938   :  { %v1953_v30 = vsel %vm1952_vm8, %v1947_v28, -1e+30 }
 0x939   :  { %1954 = vmax.xlane.f32.xlu0 %v1953_v30 }
 0x9c2   :  { %v1955_v31 = vpop.xlane.xlu0 %1954 }
 0x9c3   :  { %v1956_v32 = vsub.f32 %v1953_v30, %v1955_v31 }
 0x9c5   :  { %v1957_v33 = vmul.f32 1.442695, %v1956_v32 }
 0x9c7   :  { %2697 = vpow2.f32 %v1957_v33 }
 0x9d4   :  { %v2698_v34 = vpop.eup %2697 }
 0x9d5   :  { %1959 = vadd.xlane.f32.xlu0 %v2698_v34 }
 0x9d6   :  { %2848 = shalt.err (!%p2845_p12)
}
 0x9d7   :  { %1984 = dma.vmem_to_hbm [thread:$0]  %s1982_s18, 16, %s3955_s10, [#allocation14]  }
 0x9d8   :  { %s2901_s20 = smov [#allocation12]  }
 0x9d9   :  { %s1971_s21 = sshll.u32 %s2901_s20, 4  ;;  %s1972_s21 = int_to_ptr.vmem [resolvable:$true] %s1971_s21 }
 0x9da   :  { %s2857_s22 = scalar_lea.vmem %s1972_s21, 128  ;;  %p2862_p0 = scmp.lt.s32.totalorder %s1972_s21, %s1972_s21 }
 0x9db   :  { %p2858_p13 = scmp.ne.s32.totalorder %s1972_s21, %s2857_s22  ;;  %p2863_p1 = scmp.lt.s32.totalorder %s2857_s22, %s2857_s22 }
 0x9dd   :  { %p2864_p2 = por %p2863_p1, %p2862_p0 }
 0x9df   :  { %p2865_p3 = pnand %p2864_p2, %p2858_p13 }
 0xa5e   :  { %v1960_v35 = vpop.xlane.xlu0 %1959 }
 0xa5f   :  { %2699 = vlog2.f32 %v1960_v35 }
 0xa6c   :  { %v2700_v36 = vpop.eup %2699 }
 0xa6d   :  { %v1962_v42 = vmul.f32 0.6931472, %v2700_v36 }
 0xa6f   :  { %v1963_v37 = vsub.f32 %v1956_v32, %v1962_v42 }
 0xa71   :  { %1964 = vst [vmem:[#allocation12] sm:$0xff] %v1963_v37 }
 0xa72   :  { %2868 = shalt.err (!%p2865_p3)
}
 0xa73   :  { %1974 = dma.vmem_to_hbm [thread:$0]  %s1972_s21, 128, %s3954_s9, [#allocation6]  }
 0xa74   :  { %2885 = dma.done.wait [#allocation6], 128  }
 0xa75   :  { %2886 = vsyncadd [#allocation6], 4294967168 }
 0xa76   :  { %2887 = dma.done.wait [#allocation14], 16  }
 0xa77   :  { %2888 = vsyncadd [#allocation14], 4294967280 }
 0xa78   :  { %1991 = vsyncpa [#allocation5], 1 }
 0xa79   :  { %1992 = vsyncpa [#allocation8], 1 }
 0xa7a   :  { %1993 = vsyncpa [#allocation11], 1 }
 0xa7b   :  { %1994 = vsyncpa [#allocation6], 1 }
 0xa7c   :  { %1995 = vsyncpa [#allocation14], 1 }

</bundles_post_ra>
